<compile_context>
chip_gen: v5e
topology: v5e:2x2
jax: 0.10.0
libtpu: 0.0.40
codegen_flags: <defaults>
</compile_context>

<pallas_src>
import functools

import jax
import jax.numpy as jnp
from jax.experimental import pallas as pl
from jax.experimental.pallas import tpu as pltpu


LN_EPS = 1e-5
# MXU-operand dtype: bf16 operands, f32 accumulation. Elementwise math stays f32.
MATMUL_DTYPE = jnp.bfloat16
# Above the v5e 16 MiB scoped default, safely below v7x's 64 MiB physical VMEM.
# TODO(synk): at production sizes (E>=256, F>=1024) derive this per generation.
VMEM_LIMIT_BYTES = 32 * 1024 * 1024


# ------------------------------ in-kernel helpers ------------------------------ #

def _layer_norm(y, gamma, beta, eps):
    mean = jnp.mean(y, axis=-1, keepdims=True)
    var = jnp.mean((y - mean) ** 2, axis=-1, keepdims=True)
    return (y - mean) * jax.lax.rsqrt(var + eps) * gamma + beta


def _attention_core(q_in, k_in, v_in, wq, wk, wv, wo, bq, bk, bv, bo,
                    identity, gamma, beta, ctx_ref, *, num_heads, scale, eps):
    """MHA + residual + post-LayerNorm for one batch element.

    q_in/k_in/v_in/identity: f32 (L, E) values.  ctx_ref: (Lq, E) f32 VMEM scratch
    used to assemble the head-concatenated context so the output projection is a
    single full-width matmul.
    """
    Lq, E = q_in.shape
    dh = E // num_heads
    cd = wq.dtype  # MXU operand dtype (bf16)

    # Full-width Q/K/V projections (K = E contraction, good MXU fill); scale folded
    # into q so the scores need no extra VALU pass.
    qp = (jnp.dot(q_in.astype(cd), wq, preferred_element_type=jnp.float32) + bq) * scale
    kp = jnp.dot(k_in.astype(cd), wk, preferred_element_type=jnp.float32) + bk
    vp = jnp.dot(v_in.astype(cd), wv, preferred_element_type=jnp.float32) + bv

    # TODO(synk): tile Lk (flash-style online softmax) for large encoder lengths;
    # here the full (Lq, Lk) scores comfortably fit VMEM.
    for h in range(num_heads):
        sl = slice(h * dh, (h + 1) * dh)
        qh = qp[:, sl].astype(cd)
        kh = kp[:, sl].astype(cd)
        vh = vp[:, sl].astype(cd)
        # Scores: contract last dims directly (no explicit K transpose).
        s = jax.lax.dot_general(qh, kh,
                                dimension_numbers=(((1,), (1,)), ((), ())),
                                preferred_element_type=jnp.float32)      # (Lq, Lk)
        s = s - jnp.max(s, axis=-1, keepdims=True)
        p = jnp.exp(s)
        denom = jnp.sum(p, axis=-1, keepdims=True)                       # (Lq, 1)
        oh = jnp.dot(p.astype(cd), vh, preferred_element_type=jnp.float32)  # (Lq, dh)
        # Normalize AFTER the PV matmul: VALU work on (Lq, dh), not (Lq, Lk).
        oh = oh * pl.reciprocal(denom, approx=True)
        ctx_ref[:, sl] = oh.astype(ctx_ref.dtype)

    # ONE full-width output projection on the head-concatenated context (K = E).
    ctx = ctx_ref[...].astype(cd)
    y = identity + bo + jnp.dot(ctx, wo, preferred_element_type=jnp.float32)
    return _layer_norm(y, gamma, beta, eps)


# --------------------------------- kernels --------------------------------- #

def _self_attn_block_kernel(*refs, num_heads, scale, eps, has_pos):
    """Self-attention block: q/k = query (+ query_pos), v = query, residual = query."""
    if has_pos:
        q_ref, qpos_ref = refs[0], refs[1]
        rest = refs[2:]
    else:
        q_ref, qpos_ref = refs[0], None
        rest = refs[1:]
    (wq_ref, wk_ref, wv_ref, wo_ref, bq_ref, bk_ref, bv_ref, bo_ref,
     gamma_ref, beta_ref, o_ref, ctx_ref) = rest

    identity = q_ref[0].astype(jnp.float32)
    if has_pos:
        qk_in = identity + qpos_ref[0].astype(jnp.float32)
    else:
        qk_in = identity
    out = _attention_core(
        qk_in, qk_in, identity,
        wq_ref[...], wk_ref[...], wv_ref[...], wo_ref[...],
        bq_ref[...], bk_ref[...], bv_ref[...], bo_ref[...],
        identity, gamma_ref[...], beta_ref[...], ctx_ref,
        num_heads=num_heads, scale=scale, eps=eps)
    o_ref[0] = out.astype(o_ref.dtype)


def _cross_attn_block_kernel(*refs, num_heads, scale, eps, has_pos):
    """Cross-attention block: q = query (+ query_pos), k = key (+key_pos folded
    outside), v = value, residual = query."""
    if has_pos:
        q_ref, k_ref, v_ref, qpos_ref = refs[:4]
        rest = refs[4:]
    else:
        q_ref, k_ref, v_ref = refs[:3]
        qpos_ref = None
        rest = refs[3:]
    (wq_ref, wk_ref, wv_ref, wo_ref, bq_ref, bk_ref, bv_ref, bo_ref,
     gamma_ref, beta_ref, o_ref, ctx_ref) = rest

    identity = q_ref[0].astype(jnp.float32)
    if has_pos:
        q_in = identity + qpos_ref[0].astype(jnp.float32)
    else:
        q_in = identity
    k_in = k_ref[0].astype(jnp.float32)   # key_pos already folded in the wrapper
    v_in = v_ref[0].astype(jnp.float32)
    out = _attention_core(
        q_in, k_in, v_in,
        wq_ref[...], wk_ref[...], wv_ref[...], wo_ref[...],
        bq_ref[...], bk_ref[...], bv_ref[...], bo_ref[...],
        identity, gamma_ref[...], beta_ref[...], ctx_ref,
        num_heads=num_heads, scale=scale, eps=eps)
    o_ref[0] = out.astype(o_ref.dtype)


def _ffn_block_kernel(x_ref, w1_ref, b1_ref, w2_ref, b2_ref,
                      gamma_ref, beta_ref, o_ref, *, eps):
    """Fused FFN block: LayerNorm( x + relu(x @ W1 + b1) @ W2 + b2 )."""
    x = x_ref[...].astype(jnp.float32)                                    # (tm, E)
    cd = w1_ref.dtype
    h = jnp.dot(x.astype(cd), w1_ref[...], preferred_element_type=jnp.float32) + b1_ref[...]
    h = jnp.maximum(h, 0.0)                                               # (tm, F) stays in VMEM
    y = jnp.dot(h.astype(cd), w2_ref[...], preferred_element_type=jnp.float32) + b2_ref[...] + x
    o_ref[...] = _layer_norm(y, gamma_ref[...], beta_ref[...], eps).astype(o_ref.dtype)


# ------------------------------ kernel wrappers ------------------------------ #

def _const_spec(shape):
    return pl.BlockSpec(shape, lambda b: (0,) * len(shape))


def _batch_spec(L, E):
    return pl.BlockSpec((1, L, E), lambda b: (b, 0, 0))


def _mha_pallas_call(kernel, act_inputs, act_specs, attn_p, norm_p,
                     B, Lq, Lk, E, num_heads, out_dtype):
    w = lambda name: attn_p[name].astype(MATMUL_DTYPE)
    weight_inputs = [w("wq"), w("wk"), w("wv"), w("wo"),
                     attn_p["bq"], attn_p["bk"], attn_p["bv"], attn_p["bo"],
                     norm_p["gamma"], norm_p["beta"]]
    weight_specs = [_const_spec((E, E))] * 4 + [_const_spec((1, E))] * 6

    flops = 4 * B * E * (E * Lq + E * Lk + Lq * Lk)
    transcendentals = B * num_heads * Lq * Lk + B * Lq
    act_bytes = sum(int(a.size) * a.dtype.itemsize for a in act_inputs)
    wgt_bytes = sum(int(a.size) * a.dtype.itemsize for a in weight_inputs)
    out_bytes = B * Lq * E * jnp.dtype(out_dtype).itemsize
    cost = pl.CostEstimate(flops=int(flops), transcendentals=int(transcendentals),
                           bytes_accessed=int(act_bytes + wgt_bytes + out_bytes))

    # TODO(synk): when B == 1 add a parallel grid axis over Lq tiles so both v7x
    # TensorCores are used; TODO(synk): pad/fold the lane dim when E < 128 so output
    # stores are lane-dense (only matters for toy embed_dims).
    return pl.pallas_call(
        kernel,
        out_shape=jax.ShapeDtypeStruct((B, Lq, E), out_dtype),
        grid=(B,),
        in_specs=act_specs + weight_specs,
        out_specs=pl.BlockSpec((1, Lq, E), lambda b: (b, 0, 0)),
        scratch_shapes=[pltpu.VMEM((Lq, E), jnp.float32)],   # head-concat context
        compiler_params=pltpu.CompilerParams(
            dimension_semantics=("parallel",),
            vmem_limit_bytes=VMEM_LIMIT_BYTES),
        cost_estimate=cost,
    )(*act_inputs, *weight_inputs)


def self_attn_block(attn_p, norm_p, q, qpos, num_heads, eps=LN_EPS):
    """q / qpos: (B, L, E) batch-first.  qpos may be None."""
    B, Lq, E = q.shape
    dh = E // num_heads
    scale = 1.0 / float(dh) ** 0.5
    has_pos = qpos is not None
    kernel = functools.partial(_self_attn_block_kernel, num_heads=num_heads,
                               scale=scale, eps=eps, has_pos=has_pos)
    act_inputs = [q] + ([qpos] if has_pos else [])
    act_specs = [_batch_spec(Lq, E) for _ in act_inputs]
    return _mha_pallas_call(kernel, act_inputs, act_specs, attn_p, norm_p,
                            B, Lq, Lq, E, num_heads, q.dtype)


def cross_attn_block(attn_p, norm_p, q, k, v, qpos, num_heads, eps=LN_EPS):
    """q: (B, Lq, E); k (with key_pos already folded in), v: (B, Lk, E)."""
    B, Lq, E = q.shape
    Lk = k.shape[1]
    dh = E // num_heads
    scale = 1.0 / float(dh) ** 0.5
    has_pos = qpos is not None
    kernel = functools.partial(_cross_attn_block_kernel, num_heads=num_heads,
                               scale=scale, eps=eps, has_pos=has_pos)
    act_inputs = [q, k, v] + ([qpos] if has_pos else [])
    act_specs = ([_batch_spec(Lq, E), _batch_spec(Lk, E), _batch_spec(Lk, E)]
                 + ([_batch_spec(Lq, E)] if has_pos else []))
    return _mha_pallas_call(kernel, act_inputs, act_specs, attn_p, norm_p,
                            B, Lq, Lk, E, num_heads, q.dtype)


def _choose_ffn_tile(M):
    """Row tile: multiple of 8, divides M, >=2 grid steps when possible, <= 512."""
    if M % 8 != 0:
        return M
    tm = min(512, max(8, ((M // 2 + 7) // 8) * 8))
    tm = min(tm, M)
    if M % tm != 0:
        divisors = [d for d in range(8, tm + 1, 8) if M % d == 0]
        tm = divisors[-1] if divisors else M
    return tm


def ffn_block(ffn_p, norm_p, x, eps=LN_EPS):
    """x: (B, L, E) batch-first."""
    B, L, E = x.shape
    F = ffn_p["w1"].shape[1]
    M = B * L
    x2 = x.reshape(M, E)
    tm = _choose_ffn_tile(M)

    w1 = ffn_p["w1"].astype(MATMUL_DTYPE)
    w2 = ffn_p["w2"].astype(MATMUL_DTYPE)

    flops = 4 * M * E * F
    bytes_accessed = (2 * M * E * x.dtype.itemsize
                      + (int(w1.size) + int(w2.size)) * 2 + (F + 3 * E) * 4)
    cost = pl.CostEstimate(flops=int(flops), transcendentals=int(M),
                           bytes_accessed=int(bytes_accessed))

    out = pl.pallas_call(
        functools.partial(_ffn_block_kernel, eps=eps),
        out_shape=jax.ShapeDtypeStruct((M, E), x.dtype),
        grid=(pl.cdiv(M, tm),),
        in_specs=[
            pl.BlockSpec((tm, E), lambda i: (i, 0)),   # x (also the residual)
            _const_spec((E, F)), _const_spec((1, F)),  # w1, b1
            _const_spec((F, E)), _const_spec((1, E)),  # w2, b2
            _const_spec((1, E)), _const_spec((1, E)),  # gamma, beta
        ],
        out_specs=pl.BlockSpec((tm, E), lambda i: (i, 0)),
        input_output_aliases={0: 0},
        compiler_params=pltpu.CompilerParams(
            dimension_semantics=("parallel",),
            vmem_limit_bytes=VMEM_LIMIT_BYTES),
        cost_estimate=cost,
    )(x2, w1, ffn_p["b1"], w2, ffn_p["b2"], norm_p["gamma"], norm_p["beta"])
    return out.reshape(B, L, E)


# ----------------------------- module-level forward ----------------------------- #

def base_transformer_layer(p, q, k, v, qpos, num_heads):
    # operation_order = ('self_attn', 'norm', 'cross_attn', 'norm', 'ffn', 'norm'), post-norm.
    q = self_attn_block(p["self_attn"], p["norm0"], q, qpos, num_heads)
    q = cross_attn_block(p["cross_attn"], p["norm1"], q, k, v, qpos, num_heads)
    q = ffn_block(p["ffn"], p["norm2"], q)
    return q


@functools.partial(jax.jit, static_argnames=("num_heads",))
def transformer_layer_sequence(params, query, key, value, query_pos=None,
                               key_pos=None, *, num_heads):
    """query/key/value: (L, B, E) — PyTorch batch_first=False convention."""
    # TODO(synk): attn_masks / query_key_padding_mask / key_padding_mask not
    # implemented (test passes None); dropout has p=0.0 (eval) and is identity.
    q = jnp.transpose(query, (1, 0, 2))
    k = jnp.transpose(key, (1, 0, 2))
    v = jnp.transpose(value, (1, 0, 2))
    qpos = None if query_pos is None else jnp.transpose(query_pos, (1, 0, 2))
    # key_pos is layer-invariant: fold it into key ONCE here instead of re-adding it
    # per grid step inside every cross-attention call.
    if key_pos is not None:
        k = k + jnp.transpose(key_pos, (1, 0, 2))
    for layer_p in params:
        q = base_transformer_layer(layer_p, q, k, v, qpos, num_heads)
    return jnp.transpose(q, (1, 0, 2))


# ------------------------------- parameter init ------------------------------- #

def _xavier_uniform(key, shape):
    fan_in, fan_out = shape
    limit = (6.0 / (fan_in + fan_out)) ** 0.5
    return jax.random.uniform(key, shape, jnp.float32, -limit, limit)


def _init_attn(key, E):
    ks = jax.random.split(key, 4)
    zero_row = jnp.zeros((1, E), jnp.float32)
    return dict(
        wq=_xavier_uniform(ks[0], (E, E)), bq=zero_row,
        wk=_xavier_uniform(ks[1], (E, E)), bk=zero_row,
        wv=_xavier_uniform(ks[2], (E, E)), bv=zero_row,
        wo=_xavier_uniform(ks[3], (E, E)), bo=zero_row,
    )


def _init_ffn(key, E, F):
    k1, k2 = jax.random.split(key)
    return dict(
        w1=_xavier_uniform(k1, (E, F)), b1=jnp.zeros((1, F), jnp.float32),
        w2=_xavier_uniform(k2, (F, E)), b2=jnp.zeros((1, E), jnp.float32),
    )


def _init_layer(key, E, F):
    ks = jax.random.split(key, 3)
    ln = lambda: dict(gamma=jnp.ones((1, E), jnp.float32),
                      beta=jnp.zeros((1, E), jnp.float32))
    return dict(
        self_attn=_init_attn(ks[0], E),
        cross_attn=_init_attn(ks[1], E),
        ffn=_init_ffn(ks[2], E, F),
        norm0=ln(), norm1=ln(), norm2=ln(),
    )


def init_params(key, num_layers, E, F):
    return [_init_layer(k, E, F) for k in jax.random.split(key, num_layers)]


# ------------------------------ pure-JAX reference ------------------------------ #

def _ref_layer_norm(y, norm_p, eps=LN_EPS):
    mean = y.mean(-1, keepdims=True)
    var = ((y - mean) ** 2).mean(-1, keepdims=True)
    return (y - mean) / jnp.sqrt(var + eps) * norm_p["gamma"] + norm_p["beta"]


def _ref_mha(attn_p, norm_p, q, k, v, qpos, kpos, num_heads, mm_dtype, eps=LN_EPS):
    B, Lq, E = q.shape
    Lk = k.shape[1]
    dh = E // num_heads
    c = lambda a: a.astype(mm_dtype)
    mm = lambda a, b: jnp.einsum("ble,ef->blf", c(a), c(b),
                                 preferred_element_type=jnp.float32)
    q_in = q if qpos is None else q + qpos
    k_in = k if kpos is None else k + kpos
    qp = mm(q_in, attn_p["wq"]) + attn_p["bq"]
    kp = mm(k_in, attn_p["wk"]) + attn_p["bk"]
    vp = mm(v, attn_p["wv"]) + attn_p["bv"]
    qh = qp.reshape(B, Lq, num_heads, dh).transpose(0, 2, 1, 3)
    kh = kp.reshape(B, Lk, num_heads, dh).transpose(0, 2, 1, 3)
    vh = vp.reshape(B, Lk, num_heads, dh).transpose(0, 2, 1, 3)
    s = jnp.einsum("bhqd,bhkd->bhqk", c(qh), c(kh),
                   preferred_element_type=jnp.float32) / (dh ** 0.5)
    p = jax.nn.softmax(s, axis=-1)
    o = jnp.einsum("bhqk,bhkd->bhqd", c(p), c(vh),
                   preferred_element_type=jnp.float32)
    o = o.transpose(0, 2, 1, 3).reshape(B, Lq, E)
    out = mm(o, attn_p["wo"]) + attn_p["bo"] + q
    return _ref_layer_norm(out, norm_p, eps)


def _ref_ffn(ffn_p, norm_p, x, mm_dtype, eps=LN_EPS):
    c = lambda a: a.astype(mm_dtype)
    h = jax.nn.relu(jnp.einsum("ble,ef->blf", c(x), c(ffn_p["w1"]),
                               preferred_element_type=jnp.float32) + ffn_p["b1"])
    y = jnp.einsum("blf,fe->ble", c(h), c(ffn_p["w2"]),
                   preferred_element_type=jnp.float32) + ffn_p["b2"] + x
    return _ref_layer_norm(y, norm_p, eps)


def reference_forward(params, query, key, value, query_pos, key_pos, num_heads,
                      mm_dtype=jnp.float32):
    q = jnp.transpose(query, (1, 0, 2))
    k = jnp.transpose(key, (1, 0, 2))
    v = jnp.transpose(value, (1, 0, 2))
    qp = None if query_pos is None else jnp.transpose(query_pos, (1, 0, 2))
    kp = None if key_pos is None else jnp.transpose(key_pos, (1, 0, 2))
    for p in params:
        q = _ref_mha(p["self_attn"], p["norm0"], q, q, q, qp, qp, num_heads, mm_dtype)
        q = _ref_mha(p["cross_attn"], p["norm1"], q, k, v, qp, kp, num_heads, mm_dtype)
        q = _ref_ffn(p["ffn"], p["norm2"], q, mm_dtype)
    return jnp.transpose(q, (1, 0, 2))


# ------------------------------------- main ------------------------------------- #

if __name__ == "__main__":
    num_layers = 2
    embed_dims = 32
    num_heads = 4
    feedforward_channels = 64
    num_queries = 8
    num_keys = 8
    bs = 2

    root = jax.random.PRNGKey(0)
    k_params, kq, kk, kv, kqp, kkp = jax.random.split(root, 6)

    params = init_params(k_params, num_layers, embed_dims, feedforward_channels)

    query = jax.random.normal(kq, (num_queries, bs, embed_dims), jnp.float32)
    key_t = jax.random.normal(kk, (num_keys, bs, embed_dims), jnp.float32)
    value_t = jax.random.normal(kv, (num_keys, bs, embed_dims), jnp.float32)
    query_pos = jax.random.normal(kqp, (num_queries, bs, embed_dims), jnp.float32)
    key_pos = jax.random.normal(kkp, (num_keys, bs, embed_dims), jnp.float32)

    out = transformer_layer_sequence(params, query, key_t, value_t,
                                     query_pos, key_pos, num_heads=num_heads)
    out = jax.block_until_ready(out)

    assert out.shape == (num_queries, bs, embed_dims), out.shape
    assert bool(jnp.all(jnp.isfinite(out)))

    # Primary check: reference with matched mixed precision (bf16 MXU operands,
    # f32 accumulation) — isolates kernel-structure errors from precision choice.
    ref_mixed = reference_forward(params, query, key_t, value_t, query_pos, key_pos,
                                  num_heads, mm_dtype=MATMUL_DTYPE)
    err_mixed = float(jnp.max(jnp.abs(out - ref_mixed)))
    assert err_mixed < 1e-1, f"max abs error vs mixed-precision reference: {err_mixed}"

    # Sanity check vs pure-f32 reference (looser: bf16 operands + approx reciprocal).
    ref_f32 = reference_forward(params, query, key_t, value_t, query_pos, key_pos,
                                num_heads, mm_dtype=jnp.float32)
    err_f32 = float(jnp.max(jnp.abs(out - ref_f32)))
    assert err_f32 < 3e-1, f"max abs error vs f32 reference: {err_f32}"

    print("KERNEL_OK")
</pallas_src>

<mosaic_0001>
module attributes {stable_mosaic.version = 11 : i64} {
  func.func @_self_attn_block_kernel(%arg0: i32, %arg1: memref<1x8x32xf32, #tpu.memory_space<vmem>>, %arg2: memref<1x8x32xf32, #tpu.memory_space<vmem>>, %arg3: memref<32x32xbf16, #tpu.memory_space<vmem>>, %arg4: memref<32x32xbf16, #tpu.memory_space<vmem>>, %arg5: memref<32x32xbf16, #tpu.memory_space<vmem>>, %arg6: memref<32x32xbf16, #tpu.memory_space<vmem>>, %arg7: memref<1x32xf32, #tpu.memory_space<vmem>>, %arg8: memref<1x32xf32, #tpu.memory_space<vmem>>, %arg9: memref<1x32xf32, #tpu.memory_space<vmem>>, %arg10: memref<1x32xf32, #tpu.memory_space<vmem>>, %arg11: memref<1x32xf32, #tpu.memory_space<vmem>>, %arg12: memref<1x32xf32, #tpu.memory_space<vmem>>, %arg13: memref<1x8x32xf32, #tpu.memory_space<vmem>>, %arg14: memref<8x32xf32, #tpu.memory_space<vmem>>) attributes {dimension_semantics = [#tpu.dimension_semantics<parallel>], iteration_bounds = array<i64: 2>, scalar_prefetch = 0 : i64, scratch_operands = 1 : i64, tpu.core_type = #tpu.core_type<tc>, window_params = [{transform_indices = @transform_0, window_bounds = array<i64: 1, 8, 32>}, {transform_indices = @transform_1, window_bounds = array<i64: 1, 8, 32>}, {pipeline_mode = #tpu.pipeline_mode<synchronous>, transform_indices = @transform_2, window_bounds = array<i64: 32, 32>}, {pipeline_mode = #tpu.pipeline_mode<synchronous>, transform_indices = @transform_3, window_bounds = array<i64: 32, 32>}, {pipeline_mode = #tpu.pipeline_mode<synchronous>, transform_indices = @transform_4, window_bounds = array<i64: 32, 32>}, {pipeline_mode = #tpu.pipeline_mode<synchronous>, transform_indices = @transform_5, window_bounds = array<i64: 32, 32>}, {pipeline_mode = #tpu.pipeline_mode<synchronous>, transform_indices = @transform_6, window_bounds = array<i64: 1, 32>}, {pipeline_mode = #tpu.pipeline_mode<synchronous>, transform_indices = @transform_7, window_bounds = array<i64: 1, 32>}, {pipeline_mode = #tpu.pipeline_mode<synchronous>, transform_indices = @transform_8, window_bounds = array<i64: 1, 32>}, {pipeline_mode = #tpu.pipeline_mode<synchronous>, transform_indices = @transform_9, window_bounds = array<i64: 1, 32>}, {pipeline_mode = #tpu.pipeline_mode<synchronous>, transform_indices = @transform_10, window_bounds = array<i64: 1, 32>}, {pipeline_mode = #tpu.pipeline_mode<synchronous>, transform_indices = @transform_11, window_bounds = array<i64: 1, 32>}, {transform_indices = @transform_12, window_bounds = array<i64: 1, 8, 32>}]} {
    %c0 = arith.constant 0 : index
    %c0_0 = arith.constant 0 : index
    %c0_1 = arith.constant 0 : index
    %0 = vector.load %arg1[%c0, %c0_0, %c0_1] : memref<1x8x32xf32, #tpu.memory_space<vmem>>, vector<1x8x32xf32>
    %1 = vector.shape_cast %0 : vector<1x8x32xf32> to vector<8x32xf32>
    %c0_2 = arith.constant 0 : index
    %c0_3 = arith.constant 0 : index
    %c0_4 = arith.constant 0 : index
    %2 = vector.load %arg2[%c0_2, %c0_3, %c0_4] : memref<1x8x32xf32, #tpu.memory_space<vmem>>, vector<1x8x32xf32>
    %3 = vector.shape_cast %2 : vector<1x8x32xf32> to vector<8x32xf32>
    %4 = arith.addf %1, %3 : vector<8x32xf32>
    %c0_5 = arith.constant 0 : index
    %c0_6 = arith.constant 0 : index
    %5 = vector.load %arg3[%c0_5, %c0_6] : memref<32x32xbf16, #tpu.memory_space<vmem>>, vector<32x32xbf16>
    %c0_7 = arith.constant 0 : index
    %c0_8 = arith.constant 0 : index
    %6 = vector.load %arg4[%c0_7, %c0_8] : memref<32x32xbf16, #tpu.memory_space<vmem>>, vector<32x32xbf16>
    %c0_9 = arith.constant 0 : index
    %c0_10 = arith.constant 0 : index
    %7 = vector.load %arg5[%c0_9, %c0_10] : memref<32x32xbf16, #tpu.memory_space<vmem>>, vector<32x32xbf16>
    %c0_11 = arith.constant 0 : index
    %c0_12 = arith.constant 0 : index
    %8 = vector.load %arg6[%c0_11, %c0_12] : memref<32x32xbf16, #tpu.memory_space<vmem>>, vector<32x32xbf16>
    %c0_13 = arith.constant 0 : index
    %c0_14 = arith.constant 0 : index
    %9 = vector.load %arg7[%c0_13, %c0_14] : memref<1x32xf32, #tpu.memory_space<vmem>>, vector<1x32xf32>
    %c0_15 = arith.constant 0 : index
    %c0_16 = arith.constant 0 : index
    %10 = vector.load %arg8[%c0_15, %c0_16] : memref<1x32xf32, #tpu.memory_space<vmem>>, vector<1x32xf32>
    %c0_17 = arith.constant 0 : index
    %c0_18 = arith.constant 0 : index
    %11 = vector.load %arg9[%c0_17, %c0_18] : memref<1x32xf32, #tpu.memory_space<vmem>>, vector<1x32xf32>
    %c0_19 = arith.constant 0 : index
    %c0_20 = arith.constant 0 : index
    %12 = vector.load %arg10[%c0_19, %c0_20] : memref<1x32xf32, #tpu.memory_space<vmem>>, vector<1x32xf32>
    %c0_21 = arith.constant 0 : index
    %c0_22 = arith.constant 0 : index
    %13 = vector.load %arg11[%c0_21, %c0_22] : memref<1x32xf32, #tpu.memory_space<vmem>>, vector<1x32xf32>
    %c0_23 = arith.constant 0 : index
    %c0_24 = arith.constant 0 : index
    %14 = vector.load %arg12[%c0_23, %c0_24] : memref<1x32xf32, #tpu.memory_space<vmem>>, vector<1x32xf32>
    %15 = arith.truncf %4 : vector<8x32xf32> to vector<8x32xbf16>
    %cst = arith.constant dense<0.000000e+00> : vector<8x32xf32>
    %16 = tpu.matmul %15, %5, %cst {dimension_numbers = #tpu.dot_dimension_numbers<[1], [0], [0], [1], [0, 0, 1, 1], [], []>} : vector<8x32xbf16>, vector<32x32xbf16>, vector<8x32xf32> -> vector<8x32xf32>
    %17 = vector.broadcast %9 : vector<1x32xf32> to vector<8x32xf32>
    %18 = arith.addf %16, %17 : vector<8x32xf32>
    %cst_25 = arith.constant 0.353553385 : f32
    %19 = vector.broadcast %cst_25 : f32 to vector<8x32xf32>
    %20 = arith.mulf %18, %19 : vector<8x32xf32>
    %21 = arith.truncf %4 : vector<8x32xf32> to vector<8x32xbf16>
    %cst_26 = arith.constant dense<0.000000e+00> : vector<8x32xf32>
    %22 = tpu.matmul %21, %6, %cst_26 {dimension_numbers = #tpu.dot_dimension_numbers<[1], [0], [0], [1], [0, 0, 1, 1], [], []>} : vector<8x32xbf16>, vector<32x32xbf16>, vector<8x32xf32> -> vector<8x32xf32>
    %23 = vector.broadcast %10 : vector<1x32xf32> to vector<8x32xf32>
    %24 = arith.addf %22, %23 : vector<8x32xf32>
    %25 = arith.truncf %1 : vector<8x32xf32> to vector<8x32xbf16>
    %cst_27 = arith.constant dense<0.000000e+00> : vector<8x32xf32>
    %26 = tpu.matmul %25, %7, %cst_27 {dimension_numbers = #tpu.dot_dimension_numbers<[1], [0], [0], [1], [0, 0, 1, 1], [], []>} : vector<8x32xbf16>, vector<32x32xbf16>, vector<8x32xf32> -> vector<8x32xf32>
    %27 = vector.broadcast %11 : vector<1x32xf32> to vector<8x32xf32>
    %28 = arith.addf %26, %27 : vector<8x32xf32>
    %29 = vector.extract_strided_slice %20 {offsets = [0, 0], sizes = [8, 8], strides = [1, 1]} : vector<8x32xf32> to vector<8x8xf32>
    %30 = arith.truncf %29 : vector<8x8xf32> to vector<8x8xbf16>
    %31 = vector.extract_strided_slice %24 {offsets = [0, 0], sizes = [8, 8], strides = [1, 1]} : vector<8x32xf32> to vector<8x8xf32>
    %32 = arith.truncf %31 : vector<8x8xf32> to vector<8x8xbf16>
    %33 = vector.extract_strided_slice %28 {offsets = [0, 0], sizes = [8, 8], strides = [1, 1]} : vector<8x32xf32> to vector<8x8xf32>
    %34 = arith.truncf %33 : vector<8x8xf32> to vector<8x8xbf16>
    %cst_28 = arith.constant dense<0.000000e+00> : vector<8x8xf32>
    %35 = tpu.matmul %30, %32, %cst_28 {dimension_numbers = #tpu.dot_dimension_numbers<[1], [1], [0], [0], [0, 0, 1, 0], [], []>} : vector<8x8xbf16>, vector<8x8xbf16>, vector<8x8xf32> -> vector<8x8xf32>
    %cst_29 = arith.constant dense<0xFF800000> : vector<8xf32>
    %36 = vector.multi_reduction <maximumf>, %35, %cst_29 [1] : vector<8x8xf32> to vector<8xf32>
    %37 = vector.shape_cast %36 : vector<8xf32> to vector<8x1xf32>
    %38 = vector.broadcast %37 : vector<8x1xf32> to vector<8x8xf32>
    %39 = arith.subf %35, %38 : vector<8x8xf32>
    %40 = math.exp %39 : vector<8x8xf32>
    %cst_30 = arith.constant dense<0.000000e+00> : vector<8xf32>
    %41 = vector.multi_reduction <add>, %40, %cst_30 [1] : vector<8x8xf32> to vector<8xf32>
    %42 = vector.shape_cast %41 : vector<8xf32> to vector<8x1xf32>
    %43 = arith.truncf %40 : vector<8x8xf32> to vector<8x8xbf16>
    %cst_31 = arith.constant dense<0.000000e+00> : vector<8x8xf32>
    %44 = tpu.matmul %43, %34, %cst_31 {dimension_numbers = #tpu.dot_dimension_numbers<[1], [0], [0], [1], [0, 0, 1, 1], [], []>} : vector<8x8xbf16>, vector<8x8xbf16>, vector<8x8xf32> -> vector<8x8xf32>
    %45 = tpu.reciprocal %42 {approx = true} : vector<8x1xf32> -> vector<8x1xf32>
    %46 = vector.broadcast %45 : vector<8x1xf32> to vector<8x8xf32>
    %47 = arith.mulf %44, %46 : vector<8x8xf32>
    %c0_32 = arith.constant 0 : index
    %c0_33 = arith.constant 0 : index
    %48 = vector.load %arg14[%c0_32, %c0_33] : memref<8x32xf32, #tpu.memory_space<vmem>>, vector<8x8xf32>
    tpu.vector_store %arg14[%c0_32, %c0_33], %47 {strides = array<i32>} : memref<8x32xf32, #tpu.memory_space<vmem>>, vector<8x8xf32>,
    %49 = vector.extract_strided_slice %20 {offsets = [0, 8], sizes = [8, 8], strides = [1, 1]} : vector<8x32xf32> to vector<8x8xf32>
    %50 = arith.truncf %49 : vector<8x8xf32> to vector<8x8xbf16>
    %51 = vector.extract_strided_slice %24 {offsets = [0, 8], sizes = [8, 8], strides = [1, 1]} : vector<8x32xf32> to vector<8x8xf32>
    %52 = arith.truncf %51 : vector<8x8xf32> to vector<8x8xbf16>
    %53 = vector.extract_strided_slice %28 {offsets = [0, 8], sizes = [8, 8], strides = [1, 1]} : vector<8x32xf32> to vector<8x8xf32>
    %54 = arith.truncf %53 : vector<8x8xf32> to vector<8x8xbf16>
    %cst_34 = arith.constant dense<0.000000e+00> : vector<8x8xf32>
    %55 = tpu.matmul %50, %52, %cst_34 {dimension_numbers = #tpu.dot_dimension_numbers<[1], [1], [0], [0], [0, 0, 1, 0], [], []>} : vector<8x8xbf16>, vector<8x8xbf16>, vector<8x8xf32> -> vector<8x8xf32>
    %cst_35 = arith.constant dense<0xFF800000> : vector<8xf32>
    %56 = vector.multi_reduction <maximumf>, %55, %cst_35 [1] : vector<8x8xf32> to vector<8xf32>
    %57 = vector.shape_cast %56 : vector<8xf32> to vector<8x1xf32>
    %58 = vector.broadcast %57 : vector<8x1xf32> to vector<8x8xf32>
    %59 = arith.subf %55, %58 : vector<8x8xf32>
    %60 = math.exp %59 : vector<8x8xf32>
    %cst_36 = arith.constant dense<0.000000e+00> : vector<8xf32>
    %61 = vector.multi_reduction <add>, %60, %cst_36 [1] : vector<8x8xf32> to vector<8xf32>
    %62 = vector.shape_cast %61 : vector<8xf32> to vector<8x1xf32>
    %63 = arith.truncf %60 : vector<8x8xf32> to vector<8x8xbf16>
    %cst_37 = arith.constant dense<0.000000e+00> : vector<8x8xf32>
    %64 = tpu.matmul %63, %54, %cst_37 {dimension_numbers = #tpu.dot_dimension_numbers<[1], [0], [0], [1], [0, 0, 1, 1], [], []>} : vector<8x8xbf16>, vector<8x8xbf16>, vector<8x8xf32> -> vector<8x8xf32>
    %65 = tpu.reciprocal %62 {approx = true} : vector<8x1xf32> -> vector<8x1xf32>
    %66 = vector.broadcast %65 : vector<8x1xf32> to vector<8x8xf32>
    %67 = arith.mulf %64, %66 : vector<8x8xf32>
    %c0_38 = arith.constant 0 : index
    %c8 = arith.constant 8 : index
    %68 = vector.load %arg14[%c0_38, %c8] : memref<8x32xf32, #tpu.memory_space<vmem>>, vector<8x8xf32>
    tpu.vector_store %arg14[%c0_38, %c8], %67 {strides = array<i32>} : memref<8x32xf32, #tpu.memory_space<vmem>>, vector<8x8xf32>,
    %69 = vector.extract_strided_slice %20 {offsets = [0, 16], sizes = [8, 8], strides = [1, 1]} : vector<8x32xf32> to vector<8x8xf32>
    %70 = arith.truncf %69 : vector<8x8xf32> to vector<8x8xbf16>
    %71 = vector.extract_strided_slice %24 {offsets = [0, 16], sizes = [8, 8], strides = [1, 1]} : vector<8x32xf32> to vector<8x8xf32>
    %72 = arith.truncf %71 : vector<8x8xf32> to vector<8x8xbf16>
    %73 = vector.extract_strided_slice %28 {offsets = [0, 16], sizes = [8, 8], strides = [1, 1]} : vector<8x32xf32> to vector<8x8xf32>
    %74 = arith.truncf %73 : vector<8x8xf32> to vector<8x8xbf16>
    %cst_39 = arith.constant dense<0.000000e+00> : vector<8x8xf32>
    %75 = tpu.matmul %70, %72, %cst_39 {dimension_numbers = #tpu.dot_dimension_numbers<[1], [1], [0], [0], [0, 0, 1, 0], [], []>} : vector<8x8xbf16>, vector<8x8xbf16>, vector<8x8xf32> -> vector<8x8xf32>
    %cst_40 = arith.constant dense<0xFF800000> : vector<8xf32>
    %76 = vector.multi_reduction <maximumf>, %75, %cst_40 [1] : vector<8x8xf32> to vector<8xf32>
    %77 = vector.shape_cast %76 : vector<8xf32> to vector<8x1xf32>
    %78 = vector.broadcast %77 : vector<8x1xf32> to vector<8x8xf32>
    %79 = arith.subf %75, %78 : vector<8x8xf32>
    %80 = math.exp %79 : vector<8x8xf32>
    %cst_41 = arith.constant dense<0.000000e+00> : vector<8xf32>
    %81 = vector.multi_reduction <add>, %80, %cst_41 [1] : vector<8x8xf32> to vector<8xf32>
    %82 = vector.shape_cast %81 : vector<8xf32> to vector<8x1xf32>
    %83 = arith.truncf %80 : vector<8x8xf32> to vector<8x8xbf16>
    %cst_42 = arith.constant dense<0.000000e+00> : vector<8x8xf32>
    %84 = tpu.matmul %83, %74, %cst_42 {dimension_numbers = #tpu.dot_dimension_numbers<[1], [0], [0], [1], [0, 0, 1, 1], [], []>} : vector<8x8xbf16>, vector<8x8xbf16>, vector<8x8xf32> -> vector<8x8xf32>
    %85 = tpu.reciprocal %82 {approx = true} : vector<8x1xf32> -> vector<8x1xf32>
    %86 = vector.broadcast %85 : vector<8x1xf32> to vector<8x8xf32>
    %87 = arith.mulf %84, %86 : vector<8x8xf32>
    %c0_43 = arith.constant 0 : index
    %c16 = arith.constant 16 : index
    %88 = vector.load %arg14[%c0_43, %c16] : memref<8x32xf32, #tpu.memory_space<vmem>>, vector<8x8xf32>
    tpu.vector_store %arg14[%c0_43, %c16], %87 {strides = array<i32>} : memref<8x32xf32, #tpu.memory_space<vmem>>, vector<8x8xf32>,
    %89 = vector.extract_strided_slice %20 {offsets = [0, 24], sizes = [8, 8], strides = [1, 1]} : vector<8x32xf32> to vector<8x8xf32>
    %90 = arith.truncf %89 : vector<8x8xf32> to vector<8x8xbf16>
    %91 = vector.extract_strided_slice %24 {offsets = [0, 24], sizes = [8, 8], strides = [1, 1]} : vector<8x32xf32> to vector<8x8xf32>
    %92 = arith.truncf %91 : vector<8x8xf32> to vector<8x8xbf16>
    %93 = vector.extract_strided_slice %28 {offsets = [0, 24], sizes = [8, 8], strides = [1, 1]} : vector<8x32xf32> to vector<8x8xf32>
    %94 = arith.truncf %93 : vector<8x8xf32> to vector<8x8xbf16>
    %cst_44 = arith.constant dense<0.000000e+00> : vector<8x8xf32>
    %95 = tpu.matmul %90, %92, %cst_44 {dimension_numbers = #tpu.dot_dimension_numbers<[1], [1], [0], [0], [0, 0, 1, 0], [], []>} : vector<8x8xbf16>, vector<8x8xbf16>, vector<8x8xf32> -> vector<8x8xf32>
    %cst_45 = arith.constant dense<0xFF800000> : vector<8xf32>
    %96 = vector.multi_reduction <maximumf>, %95, %cst_45 [1] : vector<8x8xf32> to vector<8xf32>
    %97 = vector.shape_cast %96 : vector<8xf32> to vector<8x1xf32>
    %98 = vector.broadcast %97 : vector<8x1xf32> to vector<8x8xf32>
    %99 = arith.subf %95, %98 : vector<8x8xf32>
    %100 = math.exp %99 : vector<8x8xf32>
    %cst_46 = arith.constant dense<0.000000e+00> : vector<8xf32>
    %101 = vector.multi_reduction <add>, %100, %cst_46 [1] : vector<8x8xf32> to vector<8xf32>
    %102 = vector.shape_cast %101 : vector<8xf32> to vector<8x1xf32>
    %103 = arith.truncf %100 : vector<8x8xf32> to vector<8x8xbf16>
    %cst_47 = arith.constant dense<0.000000e+00> : vector<8x8xf32>
    %104 = tpu.matmul %103, %94, %cst_47 {dimension_numbers = #tpu.dot_dimension_numbers<[1], [0], [0], [1], [0, 0, 1, 1], [], []>} : vector<8x8xbf16>, vector<8x8xbf16>, vector<8x8xf32> -> vector<8x8xf32>
    %105 = tpu.reciprocal %102 {approx = true} : vector<8x1xf32> -> vector<8x1xf32>
    %106 = vector.broadcast %105 : vector<8x1xf32> to vector<8x8xf32>
    %107 = arith.mulf %104, %106 : vector<8x8xf32>
    %c0_48 = arith.constant 0 : index
    %c24 = arith.constant 24 : index
    %108 = vector.load %arg14[%c0_48, %c24] : memref<8x32xf32, #tpu.memory_space<vmem>>, vector<8x8xf32>
    tpu.vector_store %arg14[%c0_48, %c24], %107 {strides = array<i32>} : memref<8x32xf32, #tpu.memory_space<vmem>>, vector<8x8xf32>,
    %c0_49 = arith.constant 0 : index
    %c0_50 = arith.constant 0 : index
    %109 = vector.load %arg14[%c0_49, %c0_50] : memref<8x32xf32, #tpu.memory_space<vmem>>, vector<8x32xf32>
    %110 = arith.truncf %109 : vector<8x32xf32> to vector<8x32xbf16>
    %111 = vector.broadcast %12 : vector<1x32xf32> to vector<8x32xf32>
    %112 = arith.addf %1, %111 : vector<8x32xf32>
    %cst_51 = arith.constant dense<0.000000e+00> : vector<8x32xf32>
    %113 = tpu.matmul %110, %8, %cst_51 {dimension_numbers = #tpu.dot_dimension_numbers<[1], [0], [0], [1], [0, 0, 1, 1], [], []>} : vector<8x32xbf16>, vector<32x32xbf16>, vector<8x32xf32> -> vector<8x32xf32>
    %114 = arith.addf %112, %113 : vector<8x32xf32>
    %cst_52 = arith.constant dense<0.000000e+00> : vector<8xf32>
    %115 = vector.multi_reduction <add>, %114, %cst_52 [1] : vector<8x32xf32> to vector<8xf32>
    %116 = vector.shape_cast %115 : vector<8xf32> to vector<8x1xf32>
    %cst_53 = arith.constant 3.200000e+01 : f32
    %117 = vector.broadcast %cst_53 : f32 to vector<8x1xf32>
    %118 = arith.divf %116, %117 : vector<8x1xf32>
    %119 = vector.broadcast %118 : vector<8x1xf32> to vector<8x32xf32>
    %120 = arith.subf %114, %119 : vector<8x32xf32>
    %121 = arith.mulf %120, %120 : vector<8x32xf32>
    %cst_54 = arith.constant dense<0.000000e+00> : vector<8xf32>
    %122 = vector.multi_reduction <add>, %121, %cst_54 [1] : vector<8x32xf32> to vector<8xf32>
    %123 = vector.shape_cast %122 : vector<8xf32> to vector<8x1xf32>
    %cst_55 = arith.constant 3.200000e+01 : f32
    %124 = vector.broadcast %cst_55 : f32 to vector<8x1xf32>
    %125 = arith.divf %123, %124 : vector<8x1xf32>
    %126 = vector.broadcast %118 : vector<8x1xf32> to vector<8x32xf32>
    %127 = arith.subf %114, %126 : vector<8x32xf32>
    %cst_56 = arith.constant 9.99999974E-6 : f32
    %128 = vector.broadcast %cst_56 : f32 to vector<8x1xf32>
    %129 = arith.addf %125, %128 : vector<8x1xf32>
    %130 = math.rsqrt %129 : vector<8x1xf32>
    %131 = vector.broadcast %130 : vector<8x1xf32> to vector<8x32xf32>
    %132 = arith.mulf %127, %131 : vector<8x32xf32>
    %133 = vector.broadcast %13 : vector<1x32xf32> to vector<8x32xf32>
    %134 = arith.mulf %132, %133 : vector<8x32xf32>
    %135 = vector.broadcast %14 : vector<1x32xf32> to vector<8x32xf32>
    %136 = arith.addf %134, %135 : vector<8x32xf32>
    %c0_57 = arith.constant 0 : index
    %c0_58 = arith.constant 0 : index
    %c0_59 = arith.constant 0 : index
    %137 = vector.load %arg13[%c0_57, %c0_58, %c0_59] : memref<1x8x32xf32, #tpu.memory_space<vmem>>, vector<1x8x32xf32>
    %138 = vector.shape_cast %137 : vector<1x8x32xf32> to vector<8x32xf32>
    %139 = vector.shape_cast %136 : vector<8x32xf32> to vector<1x8x32xf32>
    tpu.vector_store %arg13[%c0_57, %c0_58, %c0_59], %139 {strides = array<i32>} : memref<1x8x32xf32, #tpu.memory_space<vmem>>, vector<1x8x32xf32>,
    return
  }
  func.func @transform_0(%arg0: i32) -> (i32, i32, i32) {
    %c0_i32 = arith.constant 0 : i32
    %c0_i32_0 = arith.constant 0 : i32
    %c0_i32_1 = arith.constant 0 : i32
    return %arg0, %c0_i32, %c0_i32_0 : i32, i32, i32
  }
  func.func @transform_1(%arg0: i32) -> (i32, i32, i32) {
    %c0_i32 = arith.constant 0 : i32
    %c0_i32_0 = arith.constant 0 : i32
    %c0_i32_1 = arith.constant 0 : i32
    return %arg0, %c0_i32, %c0_i32_0 : i32, i32, i32
  }
  func.func @transform_2(%arg0: i32) -> (i32, i32) {
    %c0_i32 = arith.constant 0 : i32
    %c0_i32_0 = arith.constant 0 : i32
    %c0_i32_1 = arith.constant 0 : i32
    return %c0_i32, %c0_i32_0 : i32, i32
  }
  func.func @transform_3(%arg0: i32) -> (i32, i32) {
    %c0_i32 = arith.constant 0 : i32
    %c0_i32_0 = arith.constant 0 : i32
    %c0_i32_1 = arith.constant 0 : i32
    return %c0_i32, %c0_i32_0 : i32, i32
  }
  func.func @transform_4(%arg0: i32) -> (i32, i32) {
    %c0_i32 = arith.constant 0 : i32
    %c0_i32_0 = arith.constant 0 : i32
    %c0_i32_1 = arith.constant 0 : i32
    return %c0_i32, %c0_i32_0 : i32, i32
  }
  func.func @transform_5(%arg0: i32) -> (i32, i32) {
    %c0_i32 = arith.constant 0 : i32
    %c0_i32_0 = arith.constant 0 : i32
    %c0_i32_1 = arith.constant 0 : i32
    return %c0_i32, %c0_i32_0 : i32, i32
  }
  func.func @transform_6(%arg0: i32) -> (i32, i32) {
    %c0_i32 = arith.constant 0 : i32
    %c0_i32_0 = arith.constant 0 : i32
    %c0_i32_1 = arith.constant 0 : i32
    return %c0_i32, %c0_i32_0 : i32, i32
  }
  func.func @transform_7(%arg0: i32) -> (i32, i32) {
    %c0_i32 = arith.constant 0 : i32
    %c0_i32_0 = arith.constant 0 : i32
    %c0_i32_1 = arith.constant 0 : i32
    return %c0_i32, %c0_i32_0 : i32, i32
  }
  func.func @transform_8(%arg0: i32) -> (i32, i32) {
    %c0_i32 = arith.constant 0 : i32
    %c0_i32_0 = arith.constant 0 : i32
    %c0_i32_1 = arith.constant 0 : i32
    return %c0_i32, %c0_i32_0 : i32, i32
  }
  func.func @transform_9(%arg0: i32) -> (i32, i32) {
    %c0_i32 = arith.constant 0 : i32
    %c0_i32_0 = arith.constant 0 : i32
    %c0_i32_1 = arith.constant 0 : i32
    return %c0_i32, %c0_i32_0 : i32, i32
  }
  func.func @transform_10(%arg0: i32) -> (i32, i32) {
    %c0_i32 = arith.constant 0 : i32
    %c0_i32_0 = arith.constant 0 : i32
    %c0_i32_1 = arith.constant 0 : i32
    return %c0_i32, %c0_i32_0 : i32, i32
  }
  func.func @transform_11(%arg0: i32) -> (i32, i32) {
    %c0_i32 = arith.constant 0 : i32
    %c0_i32_0 = arith.constant 0 : i32
    %c0_i32_1 = arith.constant 0 : i32
    return %c0_i32, %c0_i32_0 : i32, i32
  }
  func.func @transform_12(%arg0: i32) -> (i32, i32, i32) {
    %c0_i32 = arith.constant 0 : i32
    %c0_i32_0 = arith.constant 0 : i32
    %c0_i32_1 = arith.constant 0 : i32
    return %arg0, %c0_i32, %c0_i32_0 : i32, i32, i32
  }
}

module attributes {stable_mosaic.version = 11 : i64} {
  func.func @_cross_attn_block_kernel(%arg0: i32, %arg1: memref<1x8x32xf32, #tpu.memory_space<vmem>>, %arg2: memref<1x8x32xf32, #tpu.memory_space<vmem>>, %arg3: memref<1x8x32xf32, #tpu.memory_space<vmem>>, %arg4: memref<1x8x32xf32, #tpu.memory_space<vmem>>, %arg5: memref<32x32xbf16, #tpu.memory_space<vmem>>, %arg6: memref<32x32xbf16, #tpu.memory_space<vmem>>, %arg7: memref<32x32xbf16, #tpu.memory_space<vmem>>, %arg8: memref<32x32xbf16, #tpu.memory_space<vmem>>, %arg9: memref<1x32xf32, #tpu.memory_space<vmem>>, %arg10: memref<1x32xf32, #tpu.memory_space<vmem>>, %arg11: memref<1x32xf32, #tpu.memory_space<vmem>>, %arg12: memref<1x32xf32, #tpu.memory_space<vmem>>, %arg13: memref<1x32xf32, #tpu.memory_space<vmem>>, %arg14: memref<1x32xf32, #tpu.memory_space<vmem>>, %arg15: memref<1x8x32xf32, #tpu.memory_space<vmem>>, %arg16: memref<8x32xf32, #tpu.memory_space<vmem>>) attributes {dimension_semantics = [#tpu.dimension_semantics<parallel>], iteration_bounds = array<i64: 2>, scalar_prefetch = 0 : i64, scratch_operands = 1 : i64, tpu.core_type = #tpu.core_type<tc>, window_params = [{transform_indices = @transform_0, window_bounds = array<i64: 1, 8, 32>}, {transform_indices = @transform_1, window_bounds = array<i64: 1, 8, 32>}, {transform_indices = @transform_2, window_bounds = array<i64: 1, 8, 32>}, {transform_indices = @transform_3, window_bounds = array<i64: 1, 8, 32>}, {pipeline_mode = #tpu.pipeline_mode<synchronous>, transform_indices = @transform_4, window_bounds = array<i64: 32, 32>}, {pipeline_mode = #tpu.pipeline_mode<synchronous>, transform_indices = @transform_5, window_bounds = array<i64: 32, 32>}, {pipeline_mode = #tpu.pipeline_mode<synchronous>, transform_indices = @transform_6, window_bounds = array<i64: 32, 32>}, {pipeline_mode = #tpu.pipeline_mode<synchronous>, transform_indices = @transform_7, window_bounds = array<i64: 32, 32>}, {pipeline_mode = #tpu.pipeline_mode<synchronous>, transform_indices = @transform_8, window_bounds = array<i64: 1, 32>}, {pipeline_mode = #tpu.pipeline_mode<synchronous>, transform_indices = @transform_9, window_bounds = array<i64: 1, 32>}, {pipeline_mode = #tpu.pipeline_mode<synchronous>, transform_indices = @transform_10, window_bounds = array<i64: 1, 32>}, {pipeline_mode = #tpu.pipeline_mode<synchronous>, transform_indices = @transform_11, window_bounds = array<i64: 1, 32>}, {pipeline_mode = #tpu.pipeline_mode<synchronous>, transform_indices = @transform_12, window_bounds = array<i64: 1, 32>}, {pipeline_mode = #tpu.pipeline_mode<synchronous>, transform_indices = @transform_13, window_bounds = array<i64: 1, 32>}, {transform_indices = @transform_14, window_bounds = array<i64: 1, 8, 32>}]} {
    %c0 = arith.constant 0 : index
    %c0_0 = arith.constant 0 : index
    %c0_1 = arith.constant 0 : index
    %0 = vector.load %arg1[%c0, %c0_0, %c0_1] : memref<1x8x32xf32, #tpu.memory_space<vmem>>, vector<1x8x32xf32>
    %1 = vector.shape_cast %0 : vector<1x8x32xf32> to vector<8x32xf32>
    %c0_2 = arith.constant 0 : index
    %c0_3 = arith.constant 0 : index
    %c0_4 = arith.constant 0 : index
    %2 = vector.load %arg4[%c0_2, %c0_3, %c0_4] : memref<1x8x32xf32, #tpu.memory_space<vmem>>, vector<1x8x32xf32>
    %3 = vector.shape_cast %2 : vector<1x8x32xf32> to vector<8x32xf32>
    %4 = arith.addf %1, %3 : vector<8x32xf32>
    %c0_5 = arith.constant 0 : index
    %c0_6 = arith.constant 0 : index
    %c0_7 = arith.constant 0 : index
    %5 = vector.load %arg2[%c0_5, %c0_6, %c0_7] : memref<1x8x32xf32, #tpu.memory_space<vmem>>, vector<1x8x32xf32>
    %6 = vector.shape_cast %5 : vector<1x8x32xf32> to vector<8x32xf32>
    %c0_8 = arith.constant 0 : index
    %c0_9 = arith.constant 0 : index
    %c0_10 = arith.constant 0 : index
    %7 = vector.load %arg3[%c0_8, %c0_9, %c0_10] : memref<1x8x32xf32, #tpu.memory_space<vmem>>, vector<1x8x32xf32>
    %8 = vector.shape_cast %7 : vector<1x8x32xf32> to vector<8x32xf32>
    %c0_11 = arith.constant 0 : index
    %c0_12 = arith.constant 0 : index
    %9 = vector.load %arg5[%c0_11, %c0_12] : memref<32x32xbf16, #tpu.memory_space<vmem>>, vector<32x32xbf16>
    %c0_13 = arith.constant 0 : index
    %c0_14 = arith.constant 0 : index
    %10 = vector.load %arg6[%c0_13, %c0_14] : memref<32x32xbf16, #tpu.memory_space<vmem>>, vector<32x32xbf16>
    %c0_15 = arith.constant 0 : index
    %c0_16 = arith.constant 0 : index
    %11 = vector.load %arg7[%c0_15, %c0_16] : memref<32x32xbf16, #tpu.memory_space<vmem>>, vector<32x32xbf16>
    %c0_17 = arith.constant 0 : index
    %c0_18 = arith.constant 0 : index
    %12 = vector.load %arg8[%c0_17, %c0_18] : memref<32x32xbf16, #tpu.memory_space<vmem>>, vector<32x32xbf16>
    %c0_19 = arith.constant 0 : index
    %c0_20 = arith.constant 0 : index
    %13 = vector.load %arg9[%c0_19, %c0_20] : memref<1x32xf32, #tpu.memory_space<vmem>>, vector<1x32xf32>
    %c0_21 = arith.constant 0 : index
    %c0_22 = arith.constant 0 : index
    %14 = vector.load %arg10[%c0_21, %c0_22] : memref<1x32xf32, #tpu.memory_space<vmem>>, vector<1x32xf32>
    %c0_23 = arith.constant 0 : index
    %c0_24 = arith.constant 0 : index
    %15 = vector.load %arg11[%c0_23, %c0_24] : memref<1x32xf32, #tpu.memory_space<vmem>>, vector<1x32xf32>
    %c0_25 = arith.constant 0 : index
    %c0_26 = arith.constant 0 : index
    %16 = vector.load %arg12[%c0_25, %c0_26] : memref<1x32xf32, #tpu.memory_space<vmem>>, vector<1x32xf32>
    %c0_27 = arith.constant 0 : index
    %c0_28 = arith.constant 0 : index
    %17 = vector.load %arg13[%c0_27, %c0_28] : memref<1x32xf32, #tpu.memory_space<vmem>>, vector<1x32xf32>
    %c0_29 = arith.constant 0 : index
    %c0_30 = arith.constant 0 : index
    %18 = vector.load %arg14[%c0_29, %c0_30] : memref<1x32xf32, #tpu.memory_space<vmem>>, vector<1x32xf32>
    %19 = arith.truncf %4 : vector<8x32xf32> to vector<8x32xbf16>
    %cst = arith.constant dense<0.000000e+00> : vector<8x32xf32>
    %20 = tpu.matmul %19, %9, %cst {dimension_numbers = #tpu.dot_dimension_numbers<[1], [0], [0], [1], [0, 0, 1, 1], [], []>} : vector<8x32xbf16>, vector<32x32xbf16>, vector<8x32xf32> -> vector<8x32xf32>
    %21 = vector.broadcast %13 : vector<1x32xf32> to vector<8x32xf32>
    %22 = arith.addf %20, %21 : vector<8x32xf32>
    %cst_31 = arith.constant 0.353553385 : f32
    %23 = vector.broadcast %cst_31 : f32 to vector<8x32xf32>
    %24 = arith.mulf %22, %23 : vector<8x32xf32>
    %25 = arith.truncf %6 : vector<8x32xf32> to vector<8x32xbf16>
    %cst_32 = arith.constant dense<0.000000e+00> : vector<8x32xf32>
    %26 = tpu.matmul %25, %10, %cst_32 {dimension_numbers = #tpu.dot_dimension_numbers<[1], [0], [0], [1], [0, 0, 1, 1], [], []>} : vector<8x32xbf16>, vector<32x32xbf16>, vector<8x32xf32> -> vector<8x32xf32>
    %27 = vector.broadcast %14 : vector<1x32xf32> to vector<8x32xf32>
    %28 = arith.addf %26, %27 : vector<8x32xf32>
    %29 = arith.truncf %8 : vector<8x32xf32> to vector<8x32xbf16>
    %cst_33 = arith.constant dense<0.000000e+00> : vector<8x32xf32>
    %30 = tpu.matmul %29, %11, %cst_33 {dimension_numbers = #tpu.dot_dimension_numbers<[1], [0], [0], [1], [0, 0, 1, 1], [], []>} : vector<8x32xbf16>, vector<32x32xbf16>, vector<8x32xf32> -> vector<8x32xf32>
    %31 = vector.broadcast %15 : vector<1x32xf32> to vector<8x32xf32>
    %32 = arith.addf %30, %31 : vector<8x32xf32>
    %33 = vector.extract_strided_slice %24 {offsets = [0, 0], sizes = [8, 8], strides = [1, 1]} : vector<8x32xf32> to vector<8x8xf32>
    %34 = arith.truncf %33 : vector<8x8xf32> to vector<8x8xbf16>
    %35 = vector.extract_strided_slice %28 {offsets = [0, 0], sizes = [8, 8], strides = [1, 1]} : vector<8x32xf32> to vector<8x8xf32>
    %36 = arith.truncf %35 : vector<8x8xf32> to vector<8x8xbf16>
    %37 = vector.extract_strided_slice %32 {offsets = [0, 0], sizes = [8, 8], strides = [1, 1]} : vector<8x32xf32> to vector<8x8xf32>
    %38 = arith.truncf %37 : vector<8x8xf32> to vector<8x8xbf16>
    %cst_34 = arith.constant dense<0.000000e+00> : vector<8x8xf32>
    %39 = tpu.matmul %34, %36, %cst_34 {dimension_numbers = #tpu.dot_dimension_numbers<[1], [1], [0], [0], [0, 0, 1, 0], [], []>} : vector<8x8xbf16>, vector<8x8xbf16>, vector<8x8xf32> -> vector<8x8xf32>
    %cst_35 = arith.constant dense<0xFF800000> : vector<8xf32>
    %40 = vector.multi_reduction <maximumf>, %39, %cst_35 [1] : vector<8x8xf32> to vector<8xf32>
    %41 = vector.shape_cast %40 : vector<8xf32> to vector<8x1xf32>
    %42 = vector.broadcast %41 : vector<8x1xf32> to vector<8x8xf32>
    %43 = arith.subf %39, %42 : vector<8x8xf32>
    %44 = math.exp %43 : vector<8x8xf32>
    %cst_36 = arith.constant dense<0.000000e+00> : vector<8xf32>
    %45 = vector.multi_reduction <add>, %44, %cst_36 [1] : vector<8x8xf32> to vector<8xf32>
    %46 = vector.shape_cast %45 : vector<8xf32> to vector<8x1xf32>
    %47 = arith.truncf %44 : vector<8x8xf32> to vector<8x8xbf16>
    %cst_37 = arith.constant dense<0.000000e+00> : vector<8x8xf32>
    %48 = tpu.matmul %47, %38, %cst_37 {dimension_numbers = #tpu.dot_dimension_numbers<[1], [0], [0], [1], [0, 0, 1, 1], [], []>} : vector<8x8xbf16>, vector<8x8xbf16>, vector<8x8xf32> -> vector<8x8xf32>
    %49 = tpu.reciprocal %46 {approx = true} : vector<8x1xf32> -> vector<8x1xf32>
    %50 = vector.broadcast %49 : vector<8x1xf32> to vector<8x8xf32>
    %51 = arith.mulf %48, %50 : vector<8x8xf32>
    %c0_38 = arith.constant 0 : index
    %c0_39 = arith.constant 0 : index
    %52 = vector.load %arg16[%c0_38, %c0_39] : memref<8x32xf32, #tpu.memory_space<vmem>>, vector<8x8xf32>
    tpu.vector_store %arg16[%c0_38, %c0_39], %51 {strides = array<i32>} : memref<8x32xf32, #tpu.memory_space<vmem>>, vector<8x8xf32>,
    %53 = vector.extract_strided_slice %24 {offsets = [0, 8], sizes = [8, 8], strides = [1, 1]} : vector<8x32xf32> to vector<8x8xf32>
    %54 = arith.truncf %53 : vector<8x8xf32> to vector<8x8xbf16>
    %55 = vector.extract_strided_slice %28 {offsets = [0, 8], sizes = [8, 8], strides = [1, 1]} : vector<8x32xf32> to vector<8x8xf32>
    %56 = arith.truncf %55 : vector<8x8xf32> to vector<8x8xbf16>
    %57 = vector.extract_strided_slice %32 {offsets = [0, 8], sizes = [8, 8], strides = [1, 1]} : vector<8x32xf32> to vector<8x8xf32>
    %58 = arith.truncf %57 : vector<8x8xf32> to vector<8x8xbf16>
    %cst_40 = arith.constant dense<0.000000e+00> : vector<8x8xf32>
    %59 = tpu.matmul %54, %56, %cst_40 {dimension_numbers = #tpu.dot_dimension_numbers<[1], [1], [0], [0], [0, 0, 1, 0], [], []>} : vector<8x8xbf16>, vector<8x8xbf16>, vector<8x8xf32> -> vector<8x8xf32>
    %cst_41 = arith.constant dense<0xFF800000> : vector<8xf32>
    %60 = vector.multi_reduction <maximumf>, %59, %cst_41 [1] : vector<8x8xf32> to vector<8xf32>
    %61 = vector.shape_cast %60 : vector<8xf32> to vector<8x1xf32>
    %62 = vector.broadcast %61 : vector<8x1xf32> to vector<8x8xf32>
    %63 = arith.subf %59, %62 : vector<8x8xf32>
    %64 = math.exp %63 : vector<8x8xf32>
    %cst_42 = arith.constant dense<0.000000e+00> : vector<8xf32>
    %65 = vector.multi_reduction <add>, %64, %cst_42 [1] : vector<8x8xf32> to vector<8xf32>
    %66 = vector.shape_cast %65 : vector<8xf32> to vector<8x1xf32>
    %67 = arith.truncf %64 : vector<8x8xf32> to vector<8x8xbf16>
    %cst_43 = arith.constant dense<0.000000e+00> : vector<8x8xf32>
    %68 = tpu.matmul %67, %58, %cst_43 {dimension_numbers = #tpu.dot_dimension_numbers<[1], [0], [0], [1], [0, 0, 1, 1], [], []>} : vector<8x8xbf16>, vector<8x8xbf16>, vector<8x8xf32> -> vector<8x8xf32>
    %69 = tpu.reciprocal %66 {approx = true} : vector<8x1xf32> -> vector<8x1xf32>
    %70 = vector.broadcast %69 : vector<8x1xf32> to vector<8x8xf32>
    %71 = arith.mulf %68, %70 : vector<8x8xf32>
    %c0_44 = arith.constant 0 : index
    %c8 = arith.constant 8 : index
    %72 = vector.load %arg16[%c0_44, %c8] : memref<8x32xf32, #tpu.memory_space<vmem>>, vector<8x8xf32>
    tpu.vector_store %arg16[%c0_44, %c8], %71 {strides = array<i32>} : memref<8x32xf32, #tpu.memory_space<vmem>>, vector<8x8xf32>,
    %73 = vector.extract_strided_slice %24 {offsets = [0, 16], sizes = [8, 8], strides = [1, 1]} : vector<8x32xf32> to vector<8x8xf32>
    %74 = arith.truncf %73 : vector<8x8xf32> to vector<8x8xbf16>
    %75 = vector.extract_strided_slice %28 {offsets = [0, 16], sizes = [8, 8], strides = [1, 1]} : vector<8x32xf32> to vector<8x8xf32>
    %76 = arith.truncf %75 : vector<8x8xf32> to vector<8x8xbf16>
    %77 = vector.extract_strided_slice %32 {offsets = [0, 16], sizes = [8, 8], strides = [1, 1]} : vector<8x32xf32> to vector<8x8xf32>
    %78 = arith.truncf %77 : vector<8x8xf32> to vector<8x8xbf16>
    %cst_45 = arith.constant dense<0.000000e+00> : vector<8x8xf32>
    %79 = tpu.matmul %74, %76, %cst_45 {dimension_numbers = #tpu.dot_dimension_numbers<[1], [1], [0], [0], [0, 0, 1, 0], [], []>} : vector<8x8xbf16>, vector<8x8xbf16>, vector<8x8xf32> -> vector<8x8xf32>
    %cst_46 = arith.constant dense<0xFF800000> : vector<8xf32>
    %80 = vector.multi_reduction <maximumf>, %79, %cst_46 [1] : vector<8x8xf32> to vector<8xf32>
    %81 = vector.shape_cast %80 : vector<8xf32> to vector<8x1xf32>
    %82 = vector.broadcast %81 : vector<8x1xf32> to vector<8x8xf32>
    %83 = arith.subf %79, %82 : vector<8x8xf32>
    %84 = math.exp %83 : vector<8x8xf32>
    %cst_47 = arith.constant dense<0.000000e+00> : vector<8xf32>
    %85 = vector.multi_reduction <add>, %84, %cst_47 [1] : vector<8x8xf32> to vector<8xf32>
    %86 = vector.shape_cast %85 : vector<8xf32> to vector<8x1xf32>
    %87 = arith.truncf %84 : vector<8x8xf32> to vector<8x8xbf16>
    %cst_48 = arith.constant dense<0.000000e+00> : vector<8x8xf32>
    %88 = tpu.matmul %87, %78, %cst_48 {dimension_numbers = #tpu.dot_dimension_numbers<[1], [0], [0], [1], [0, 0, 1, 1], [], []>} : vector<8x8xbf16>, vector<8x8xbf16>, vector<8x8xf32> -> vector<8x8xf32>
    %89 = tpu.reciprocal %86 {approx = true} : vector<8x1xf32> -> vector<8x1xf32>
    %90 = vector.broadcast %89 : vector<8x1xf32> to vector<8x8xf32>
    %91 = arith.mulf %88, %90 : vector<8x8xf32>
    %c0_49 = arith.constant 0 : index
    %c16 = arith.constant 16 : index
    %92 = vector.load %arg16[%c0_49, %c16] : memref<8x32xf32, #tpu.memory_space<vmem>>, vector<8x8xf32>
    tpu.vector_store %arg16[%c0_49, %c16], %91 {strides = array<i32>} : memref<8x32xf32, #tpu.memory_space<vmem>>, vector<8x8xf32>,
    %93 = vector.extract_strided_slice %24 {offsets = [0, 24], sizes = [8, 8], strides = [1, 1]} : vector<8x32xf32> to vector<8x8xf32>
    %94 = arith.truncf %93 : vector<8x8xf32> to vector<8x8xbf16>
    %95 = vector.extract_strided_slice %28 {offsets = [0, 24], sizes = [8, 8], strides = [1, 1]} : vector<8x32xf32> to vector<8x8xf32>
    %96 = arith.truncf %95 : vector<8x8xf32> to vector<8x8xbf16>
    %97 = vector.extract_strided_slice %32 {offsets = [0, 24], sizes = [8, 8], strides = [1, 1]} : vector<8x32xf32> to vector<8x8xf32>
    %98 = arith.truncf %97 : vector<8x8xf32> to vector<8x8xbf16>
    %cst_50 = arith.constant dense<0.000000e+00> : vector<8x8xf32>
    %99 = tpu.matmul %94, %96, %cst_50 {dimension_numbers = #tpu.dot_dimension_numbers<[1], [1], [0], [0], [0, 0, 1, 0], [], []>} : vector<8x8xbf16>, vector<8x8xbf16>, vector<8x8xf32> -> vector<8x8xf32>
    %cst_51 = arith.constant dense<0xFF800000> : vector<8xf32>
    %100 = vector.multi_reduction <maximumf>, %99, %cst_51 [1] : vector<8x8xf32> to vector<8xf32>
    %101 = vector.shape_cast %100 : vector<8xf32> to vector<8x1xf32>
    %102 = vector.broadcast %101 : vector<8x1xf32> to vector<8x8xf32>
    %103 = arith.subf %99, %102 : vector<8x8xf32>
    %104 = math.exp %103 : vector<8x8xf32>
    %cst_52 = arith.constant dense<0.000000e+00> : vector<8xf32>
    %105 = vector.multi_reduction <add>, %104, %cst_52 [1] : vector<8x8xf32> to vector<8xf32>
    %106 = vector.shape_cast %105 : vector<8xf32> to vector<8x1xf32>
    %107 = arith.truncf %104 : vector<8x8xf32> to vector<8x8xbf16>
    %cst_53 = arith.constant dense<0.000000e+00> : vector<8x8xf32>
    %108 = tpu.matmul %107, %98, %cst_53 {dimension_numbers = #tpu.dot_dimension_numbers<[1], [0], [0], [1], [0, 0, 1, 1], [], []>} : vector<8x8xbf16>, vector<8x8xbf16>, vector<8x8xf32> -> vector<8x8xf32>
    %109 = tpu.reciprocal %106 {approx = true} : vector<8x1xf32> -> vector<8x1xf32>
    %110 = vector.broadcast %109 : vector<8x1xf32> to vector<8x8xf32>
    %111 = arith.mulf %108, %110 : vector<8x8xf32>
    %c0_54 = arith.constant 0 : index
    %c24 = arith.constant 24 : index
    %112 = vector.load %arg16[%c0_54, %c24] : memref<8x32xf32, #tpu.memory_space<vmem>>, vector<8x8xf32>
    tpu.vector_store %arg16[%c0_54, %c24], %111 {strides = array<i32>} : memref<8x32xf32, #tpu.memory_space<vmem>>, vector<8x8xf32>,
    %c0_55 = arith.constant 0 : index
    %c0_56 = arith.constant 0 : index
    %113 = vector.load %arg16[%c0_55, %c0_56] : memref<8x32xf32, #tpu.memory_space<vmem>>, vector<8x32xf32>
    %114 = arith.truncf %113 : vector<8x32xf32> to vector<8x32xbf16>
    %115 = vector.broadcast %16 : vector<1x32xf32> to vector<8x32xf32>
    %116 = arith.addf %1, %115 : vector<8x32xf32>
    %cst_57 = arith.constant dense<0.000000e+00> : vector<8x32xf32>
    %117 = tpu.matmul %114, %12, %cst_57 {dimension_numbers = #tpu.dot_dimension_numbers<[1], [0], [0], [1], [0, 0, 1, 1], [], []>} : vector<8x32xbf16>, vector<32x32xbf16>, vector<8x32xf32> -> vector<8x32xf32>
    %118 = arith.addf %116, %117 : vector<8x32xf32>
    %cst_58 = arith.constant dense<0.000000e+00> : vector<8xf32>
    %119 = vector.multi_reduction <add>, %118, %cst_58 [1] : vector<8x32xf32> to vector<8xf32>
    %120 = vector.shape_cast %119 : vector<8xf32> to vector<8x1xf32>
    %cst_59 = arith.constant 3.200000e+01 : f32
    %121 = vector.broadcast %cst_59 : f32 to vector<8x1xf32>
    %122 = arith.divf %120, %121 : vector<8x1xf32>
    %123 = vector.broadcast %122 : vector<8x1xf32> to vector<8x32xf32>
    %124 = arith.subf %118, %123 : vector<8x32xf32>
    %125 = arith.mulf %124, %124 : vector<8x32xf32>
    %cst_60 = arith.constant dense<0.000000e+00> : vector<8xf32>
    %126 = vector.multi_reduction <add>, %125, %cst_60 [1] : vector<8x32xf32> to vector<8xf32>
    %127 = vector.shape_cast %126 : vector<8xf32> to vector<8x1xf32>
    %cst_61 = arith.constant 3.200000e+01 : f32
    %128 = vector.broadcast %cst_61 : f32 to vector<8x1xf32>
    %129 = arith.divf %127, %128 : vector<8x1xf32>
    %130 = vector.broadcast %122 : vector<8x1xf32> to vector<8x32xf32>
    %131 = arith.subf %118, %130 : vector<8x32xf32>
    %cst_62 = arith.constant 9.99999974E-6 : f32
    %132 = vector.broadcast %cst_62 : f32 to vector<8x1xf32>
    %133 = arith.addf %129, %132 : vector<8x1xf32>
    %134 = math.rsqrt %133 : vector<8x1xf32>
    %135 = vector.broadcast %134 : vector<8x1xf32> to vector<8x32xf32>
    %136 = arith.mulf %131, %135 : vector<8x32xf32>
    %137 = vector.broadcast %17 : vector<1x32xf32> to vector<8x32xf32>
    %138 = arith.mulf %136, %137 : vector<8x32xf32>
    %139 = vector.broadcast %18 : vector<1x32xf32> to vector<8x32xf32>
    %140 = arith.addf %138, %139 : vector<8x32xf32>
    %c0_63 = arith.constant 0 : index
    %c0_64 = arith.constant 0 : index
    %c0_65 = arith.constant 0 : index
    %141 = vector.load %arg15[%c0_63, %c0_64, %c0_65] : memref<1x8x32xf32, #tpu.memory_space<vmem>>, vector<1x8x32xf32>
    %142 = vector.shape_cast %141 : vector<1x8x32xf32> to vector<8x32xf32>
    %143 = vector.shape_cast %140 : vector<8x32xf32> to vector<1x8x32xf32>
    tpu.vector_store %arg15[%c0_63, %c0_64, %c0_65], %143 {strides = array<i32>} : memref<1x8x32xf32, #tpu.memory_space<vmem>>, vector<1x8x32xf32>,
    return
  }
  func.func @transform_0(%arg0: i32) -> (i32, i32, i32) {
    %c0_i32 = arith.constant 0 : i32
    %c0_i32_0 = arith.constant 0 : i32
    %c0_i32_1 = arith.constant 0 : i32
    return %arg0, %c0_i32, %c0_i32_0 : i32, i32, i32
  }
  func.func @transform_1(%arg0: i32) -> (i32, i32, i32) {
    %c0_i32 = arith.constant 0 : i32
    %c0_i32_0 = arith.constant 0 : i32
    %c0_i32_1 = arith.constant 0 : i32
    return %arg0, %c0_i32, %c0_i32_0 : i32, i32, i32
  }
  func.func @transform_2(%arg0: i32) -> (i32, i32, i32) {
    %c0_i32 = arith.constant 0 : i32
    %c0_i32_0 = arith.constant 0 : i32
    %c0_i32_1 = arith.constant 0 : i32
    return %arg0, %c0_i32, %c0_i32_0 : i32, i32, i32
  }
  func.func @transform_3(%arg0: i32) -> (i32, i32, i32) {
    %c0_i32 = arith.constant 0 : i32
    %c0_i32_0 = arith.constant 0 : i32
    %c0_i32_1 = arith.constant 0 : i32
    return %arg0, %c0_i32, %c0_i32_0 : i32, i32, i32
  }
  func.func @transform_4(%arg0: i32) -> (i32, i32) {
    %c0_i32 = arith.constant 0 : i32
    %c0_i32_0 = arith.constant 0 : i32
    %c0_i32_1 = arith.constant 0 : i32
    return %c0_i32, %c0_i32_0 : i32, i32
  }
  func.func @transform_5(%arg0: i32) -> (i32, i32) {
    %c0_i32 = arith.constant 0 : i32
    %c0_i32_0 = arith.constant 0 : i32
    %c0_i32_1 = arith.constant 0 : i32
    return %c0_i32, %c0_i32_0 : i32, i32
  }
  func.func @transform_6(%arg0: i32) -> (i32, i32) {
    %c0_i32 = arith.constant 0 : i32
    %c0_i32_0 = arith.constant 0 : i32
    %c0_i32_1 = arith.constant 0 : i32
    return %c0_i32, %c0_i32_0 : i32, i32
  }
  func.func @transform_7(%arg0: i32) -> (i32, i32) {
    %c0_i32 = arith.constant 0 : i32
    %c0_i32_0 = arith.constant 0 : i32
    %c0_i32_1 = arith.constant 0 : i32
    return %c0_i32, %c0_i32_0 : i32, i32
  }
  func.func @transform_8(%arg0: i32) -> (i32, i32) {
    %c0_i32 = arith.constant 0 : i32
    %c0_i32_0 = arith.constant 0 : i32
    %c0_i32_1 = arith.constant 0 : i32
    return %c0_i32, %c0_i32_0 : i32, i32
  }
  func.func @transform_9(%arg0: i32) -> (i32, i32) {
    %c0_i32 = arith.constant 0 : i32
    %c0_i32_0 = arith.constant 0 : i32
    %c0_i32_1 = arith.constant 0 : i32
    return %c0_i32, %c0_i32_0 : i32, i32
  }
  func.func @transform_10(%arg0: i32) -> (i32, i32) {
    %c0_i32 = arith.constant 0 : i32
    %c0_i32_0 = arith.constant 0 : i32
    %c0_i32_1 = arith.constant 0 : i32
    return %c0_i32, %c0_i32_0 : i32, i32
  }
  func.func @transform_11(%arg0: i32) -> (i32, i32) {
    %c0_i32 = arith.constant 0 : i32
    %c0_i32_0 = arith.constant 0 : i32
    %c0_i32_1 = arith.constant 0 : i32
    return %c0_i32, %c0_i32_0 : i32, i32
  }
  func.func @transform_12(%arg0: i32) -> (i32, i32) {
    %c0_i32 = arith.constant 0 : i32
    %c0_i32_0 = arith.constant 0 : i32
    %c0_i32_1 = arith.constant 0 : i32
    return %c0_i32, %c0_i32_0 : i32, i32
  }
  func.func @transform_13(%arg0: i32) -> (i32, i32) {
    %c0_i32 = arith.constant 0 : i32
    %c0_i32_0 = arith.constant 0 : i32
    %c0_i32_1 = arith.constant 0 : i32
    return %c0_i32, %c0_i32_0 : i32, i32
  }
  func.func @transform_14(%arg0: i32) -> (i32, i32, i32) {
    %c0_i32 = arith.constant 0 : i32
    %c0_i32_0 = arith.constant 0 : i32
    %c0_i32_1 = arith.constant 0 : i32
    return %arg0, %c0_i32, %c0_i32_0 : i32, i32, i32
  }
}

module attributes {stable_mosaic.version = 11 : i64} {
  func.func @_ffn_block_kernel(%arg0: i32, %arg1: memref<8x32xf32, #tpu.memory_space<vmem>>, %arg2: memref<32x64xbf16, #tpu.memory_space<vmem>>, %arg3: memref<1x64xf32, #tpu.memory_space<vmem>>, %arg4: memref<64x32xbf16, #tpu.memory_space<vmem>>, %arg5: memref<1x32xf32, #tpu.memory_space<vmem>>, %arg6: memref<1x32xf32, #tpu.memory_space<vmem>>, %arg7: memref<1x32xf32, #tpu.memory_space<vmem>>, %arg8: memref<8x32xf32, #tpu.memory_space<vmem>>) attributes {dimension_semantics = [#tpu.dimension_semantics<parallel>], iteration_bounds = array<i64: 2>, scalar_prefetch = 0 : i64, scratch_operands = 0 : i64, tpu.core_type = #tpu.core_type<tc>, window_params = [{transform_indices = @transform_0, window_bounds = array<i64: 8, 32>}, {pipeline_mode = #tpu.pipeline_mode<synchronous>, transform_indices = @transform_1, window_bounds = array<i64: 32, 64>}, {pipeline_mode = #tpu.pipeline_mode<synchronous>, transform_indices = @transform_2, window_bounds = array<i64: 1, 64>}, {pipeline_mode = #tpu.pipeline_mode<synchronous>, transform_indices = @transform_3, window_bounds = array<i64: 64, 32>}, {pipeline_mode = #tpu.pipeline_mode<synchronous>, transform_indices = @transform_4, window_bounds = array<i64: 1, 32>}, {pipeline_mode = #tpu.pipeline_mode<synchronous>, transform_indices = @transform_5, window_bounds = array<i64: 1, 32>}, {pipeline_mode = #tpu.pipeline_mode<synchronous>, transform_indices = @transform_6, window_bounds = array<i64: 1, 32>}, {transform_indices = @transform_7, window_bounds = array<i64: 8, 32>}]} {
    %c0 = arith.constant 0 : index
    %c0_0 = arith.constant 0 : index
    %0 = vector.load %arg1[%c0, %c0_0] : memref<8x32xf32, #tpu.memory_space<vmem>>, vector<8x32xf32>
    %1 = arith.truncf %0 : vector<8x32xf32> to vector<8x32xbf16>
    %c0_1 = arith.constant 0 : index
    %c0_2 = arith.constant 0 : index
    %2 = vector.load %arg2[%c0_1, %c0_2] : memref<32x64xbf16, #tpu.memory_space<vmem>>, vector<32x64xbf16>
    %cst = arith.constant dense<0.000000e+00> : vector<8x64xf32>
    %3 = tpu.matmul %1, %2, %cst {dimension_numbers = #tpu.dot_dimension_numbers<[1], [0], [0], [1], [0, 0, 1, 1], [], []>} : vector<8x32xbf16>, vector<32x64xbf16>, vector<8x64xf32> -> vector<8x64xf32>
    %c0_3 = arith.constant 0 : index
    %c0_4 = arith.constant 0 : index
    %4 = vector.load %arg3[%c0_3, %c0_4] : memref<1x64xf32, #tpu.memory_space<vmem>>, vector<1x64xf32>
    %5 = vector.broadcast %4 : vector<1x64xf32> to vector<8x64xf32>
    %6 = arith.addf %3, %5 : vector<8x64xf32>
    %cst_5 = arith.constant 0.000000e+00 : f32
    %7 = vector.broadcast %cst_5 : f32 to vector<8x64xf32>
    %8 = arith.maximumf %6, %7 : vector<8x64xf32>
    %9 = arith.truncf %8 : vector<8x64xf32> to vector<8x64xbf16>
    %c0_6 = arith.constant 0 : index
    %c0_7 = arith.constant 0 : index
    %10 = vector.load %arg4[%c0_6, %c0_7] : memref<64x32xbf16, #tpu.memory_space<vmem>>, vector<64x32xbf16>
    %cst_8 = arith.constant dense<0.000000e+00> : vector<8x32xf32>
    %11 = tpu.matmul %9, %10, %cst_8 {dimension_numbers = #tpu.dot_dimension_numbers<[1], [0], [0], [1], [0, 0, 1, 1], [], []>} : vector<8x64xbf16>, vector<64x32xbf16>, vector<8x32xf32> -> vector<8x32xf32>
    %c0_9 = arith.constant 0 : index
    %c0_10 = arith.constant 0 : index
    %12 = vector.load %arg5[%c0_9, %c0_10] : memref<1x32xf32, #tpu.memory_space<vmem>>, vector<1x32xf32>
    %13 = vector.broadcast %12 : vector<1x32xf32> to vector<8x32xf32>
    %14 = arith.addf %11, %13 : vector<8x32xf32>
    %15 = arith.addf %14, %0 : vector<8x32xf32>
    %c0_11 = arith.constant 0 : index
    %c0_12 = arith.constant 0 : index
    %16 = vector.load %arg6[%c0_11, %c0_12] : memref<1x32xf32, #tpu.memory_space<vmem>>, vector<1x32xf32>
    %c0_13 = arith.constant 0 : index
    %c0_14 = arith.constant 0 : index
    %17 = vector.load %arg7[%c0_13, %c0_14] : memref<1x32xf32, #tpu.memory_space<vmem>>, vector<1x32xf32>
    %cst_15 = arith.constant dense<0.000000e+00> : vector<8xf32>
    %18 = vector.multi_reduction <add>, %15, %cst_15 [1] : vector<8x32xf32> to vector<8xf32>
    %19 = vector.shape_cast %18 : vector<8xf32> to vector<8x1xf32>
    %cst_16 = arith.constant 3.200000e+01 : f32
    %20 = vector.broadcast %cst_16 : f32 to vector<8x1xf32>
    %21 = arith.divf %19, %20 : vector<8x1xf32>
    %22 = vector.broadcast %21 : vector<8x1xf32> to vector<8x32xf32>
    %23 = arith.subf %15, %22 : vector<8x32xf32>
    %24 = arith.mulf %23, %23 : vector<8x32xf32>
    %cst_17 = arith.constant dense<0.000000e+00> : vector<8xf32>
    %25 = vector.multi_reduction <add>, %24, %cst_17 [1] : vector<8x32xf32> to vector<8xf32>
    %26 = vector.shape_cast %25 : vector<8xf32> to vector<8x1xf32>
    %cst_18 = arith.constant 3.200000e+01 : f32
    %27 = vector.broadcast %cst_18 : f32 to vector<8x1xf32>
    %28 = arith.divf %26, %27 : vector<8x1xf32>
    %29 = vector.broadcast %21 : vector<8x1xf32> to vector<8x32xf32>
    %30 = arith.subf %15, %29 : vector<8x32xf32>
    %cst_19 = arith.constant 9.99999974E-6 : f32
    %31 = vector.broadcast %cst_19 : f32 to vector<8x1xf32>
    %32 = arith.addf %28, %31 : vector<8x1xf32>
    %33 = math.rsqrt %32 : vector<8x1xf32>
    %34 = vector.broadcast %33 : vector<8x1xf32> to vector<8x32xf32>
    %35 = arith.mulf %30, %34 : vector<8x32xf32>
    %36 = vector.broadcast %16 : vector<1x32xf32> to vector<8x32xf32>
    %37 = arith.mulf %35, %36 : vector<8x32xf32>
    %38 = vector.broadcast %17 : vector<1x32xf32> to vector<8x32xf32>
    %39 = arith.addf %37, %38 : vector<8x32xf32>
    %c0_20 = arith.constant 0 : index
    %c0_21 = arith.constant 0 : index
    %40 = vector.load %arg8[%c0_20, %c0_21] : memref<8x32xf32, #tpu.memory_space<vmem>>, vector<8x32xf32>
    tpu.vector_store %arg8[%c0_20, %c0_21], %39 {strides = array<i32>} : memref<8x32xf32, #tpu.memory_space<vmem>>, vector<8x32xf32>,
    return
  }
  func.func @transform_0(%arg0: i32) -> (i32, i32) {
    %c0_i32 = arith.constant 0 : i32
    %c0_i32_0 = arith.constant 0 : i32
    return %arg0, %c0_i32 : i32, i32
  }
  func.func @transform_1(%arg0: i32) -> (i32, i32) {
    %c0_i32 = arith.constant 0 : i32
    %c0_i32_0 = arith.constant 0 : i32
    %c0_i32_1 = arith.constant 0 : i32
    return %c0_i32, %c0_i32_0 : i32, i32
  }
  func.func @transform_2(%arg0: i32) -> (i32, i32) {
    %c0_i32 = arith.constant 0 : i32
    %c0_i32_0 = arith.constant 0 : i32
    %c0_i32_1 = arith.constant 0 : i32
    return %c0_i32, %c0_i32_0 : i32, i32
  }
  func.func @transform_3(%arg0: i32) -> (i32, i32) {
    %c0_i32 = arith.constant 0 : i32
    %c0_i32_0 = arith.constant 0 : i32
    %c0_i32_1 = arith.constant 0 : i32
    return %c0_i32, %c0_i32_0 : i32, i32
  }
  func.func @transform_4(%arg0: i32) -> (i32, i32) {
    %c0_i32 = arith.constant 0 : i32
    %c0_i32_0 = arith.constant 0 : i32
    %c0_i32_1 = arith.constant 0 : i32
    return %c0_i32, %c0_i32_0 : i32, i32
  }
  func.func @transform_5(%arg0: i32) -> (i32, i32) {
    %c0_i32 = arith.constant 0 : i32
    %c0_i32_0 = arith.constant 0 : i32
    %c0_i32_1 = arith.constant 0 : i32
    return %c0_i32, %c0_i32_0 : i32, i32
  }
  func.func @transform_6(%arg0: i32) -> (i32, i32) {
    %c0_i32 = arith.constant 0 : i32
    %c0_i32_0 = arith.constant 0 : i32
    %c0_i32_1 = arith.constant 0 : i32
    return %c0_i32, %c0_i32_0 : i32, i32
  }
  func.func @transform_7(%arg0: i32) -> (i32, i32) {
    %c0_i32 = arith.constant 0 : i32
    %c0_i32_0 = arith.constant 0 : i32
    return %arg0, %c0_i32 : i32, i32
  }
}

</mosaic_0001>

<bundles_post_ra>
// kernel: transformer_layer_sequence.8
= control target key start
LH: loop header
LB: loop body
LE: loop exit
PB: predicated region body
PF: predicated region fallthrough
CT: control target
= control target key end

     0   :  { %s570_s24 = smov 0   ;;  %s628_s0 = inlined_call_operand.vmem [shape: f32[16,32], index: 0, kind: input, shape index: {}, may-alias: {0,7}]   ;;  %s629_s1 = inlined_call_operand.vmem [shape: bf16[32,64], index: 1, kind: input, shape index: {}]   ;;  %s630_s2 = inlined_call_operand.vmem [shape: f32[1,64], index: 2, kind: input, shape index: {}]   ;;  %s631_s3 = inlined_call_operand.vmem [shape: bf16[64,32], index: 3, kind: input, shape index: {}]   ;;  %s632_s4 = inlined_call_operand.vmem [shape: f32[1,32], index: 4, kind: input, shape index: {}]   ;;  %s633_s5 = inlined_call_operand.vmem [shape: f32[1,32], index: 5, kind: input, shape index: {}]   ;;  %s634_s6 = inlined_call_operand.vmem [shape: f32[1,32], index: 6, kind: input, shape index: {}]   ;;  %s635_s7 = inlined_call_operand.vmem [shape: f32[16,32], index: 7, kind: output, shape index: {}, may-alias: {0,7}]  }
   0x1 LB: > { %s463_s25 = sadd.s32 4294967295, %s527_s24   ;;  %p467_p0 = scmp.ge.s32.totalorder %s527_s24, 1  ;;  %s527_s24 = sphi %s570_s24, %s17_s24  }
   0x2   : > { %p236_p1 = scmp.lt.s32.totalorder %s527_s24, 3 }
   0x4   : > { %p237_p2 = pnand %p467_p0, %p236_p1 }
   0x5   : > { %p266_p3 = scmp.lt.s32.totalorder (!%p237_p2), %s463_s25, 1 }
   0x6   : > { %240 = sbr.rel (%p237_p2) target bundleno = 550 (0x226), region = 48 }
   0xb   : > { %v499_v0 = vld [vmem:[%s629_s1 + $0x8] sm:$0xff]  ;;  %v503_v1 = vld [vmem:[%s631_s3 + $0x18] sm:$0xff]  ;;  %v498_v2 = vld [vmem:[%s629_s1] sm:$0xff]  ;;  %s637_s25 = smov (!%p266_p3, %s463_s25), 1  ;;  %vm297_vm0 = vcmask 261120   ;;  %vm352_vm1 = vcmask 523264  }
   0xc   : > { %307 = vmatpush.bf16.msra.mxu0 %v499_v0  ;;  %360 = vmatpush.bf16.msra.mxu1 %v503_v1  ;;  %v502_v3 = vld [vmem:[%s631_s3 + $0x10] sm:$0xff]  ;;  %s468_s11 = sshll.u32 %s637_s25, 3  ;;  %v501_v6 = vld [vmem:[%s631_s3 + $0x8] sm:$0xff]  ;;  %v500_v7 = vld [vmem:[%s631_s3] sm:$0xff]  ;;  %v529_v20 = vmov 32.0  }
   0xd   : > { %s269_s14 = scalar_lea.vmem %s628_s0, %s468_s11  ;;  %v513_v8 = vld [vmem:[%s630_s2] ss:$0 sm:$0xff]  ;;  %517 = vrcp.f32 %v529_v20  ;;  %s273_s8 = scalar_lea.vmem %s635_s7, %s468_s11 }
   0xe   : > { %v275_v4 = vld [vmem:[%s269_s14] sm:$0xff] }
   0xf   : > { %v276_v5 = vpack.c.bf16 %v275_v4, %v275_v4  ;;  %v514_v14 = vld [vmem:[%s632_s4] ss:$0 sm:$0xff] }
  0x10   : > { %308 = vmatpush.bf16.msra.mxu0 %v498_v2  ;;  %361 = vmatpush.bf16.msra.mxu1 %v502_v3  ;;  %v515_v41 = vld [vmem:[%s633_s5] ss:$0 sm:$0xff] }
  0x11   : > { %v516_v43 = vld [vmem:[%s634_s6] ss:$0 sm:$0xff] }
  0x13   : > { %478 = vmatmul.msk.bf16.vlgmr.msra.gmra.mxu0 %vm297_vm0, %v276_v5  ;;  %v518_v21 = vpop.eup %517 }
  0x14   : > { %362 = vmatpush.bf16.msra.mxu1 %v501_v6  ;;  %v376_v22 = vmul.f32 32.0, %v518_v21  ;;  %vm380_vm2 = vweird.f32 %v518_v21 }
  0x16   : > { %v377_v23 = vsub.f32 1.0, %v376_v22 }
  0x18   : > { %363 = vmatpush.bf16.msra.mxu1 %v500_v7  ;;  %v378_v24 = vmul.f32 %v518_v21, %v377_v23 }
  0x1a   : > { %v379_v25 = vadd.f32 %v518_v21, %v378_v24 }
  0x1c   : > { %v381_v26 = vsel %vm380_vm2, %v518_v21, %v379_v25 }
  0x90   : > { %v310_v9 = vpop.f32.mrf.mxu0 }
  0x91   : > { %v311_v10 = vadd.f32 %v513_v8, %v310_v9 }
  0x93   : > { %v314_v11 = vmax.f32 %v311_v10, 0.0 }
  0x95   : > { %v315_v12 = vpack.c.bf16 %v314_v11, %v314_v11 }
  0x97   : > { %495 = vmatmul.msk.bf16.vlgmr.msra.gmra.mxu1 %vm352_vm1, %v315_v12 }
  0x98   : > { %v312_v13 = vpop.f32.mrf.mxu0 }
 0x114   : > { %v365_v15 = vpop.f32.mrf.mxu1 }
 0x115   : > { %v366_v16 = vadd.f32 %v514_v14, %v365_v15 }
 0x117   : > { %v369_v17 = vadd.f32 %v366_v16, %v275_v4 }
 0x119   : > { %v372_v18 = vsel %vm297_vm0, %v369_v17, 0.0 }
 0x11a   : > { %373 = vadd.xlane.f32.xlu0 %v372_v18 }
 0x11c   : > { %v367_v19 = vpop.f32.mrf.mxu1 }
 0x18d   : > { %v374_v27 = vpop.xlane.xlu0 %373 }
 0x18e   : > { %v382_v28 = vmul.f32 %v381_v26, %v374_v27 }
 0x190   : > { %v383_v29 = vsub.f32 %v369_v17, %v382_v28 }
 0x192   : > { %v384_v30 = vmul.f32 %v383_v29, %v383_v29 }
 0x194   : > { %v385_v31 = vsel %vm297_vm0, %v384_v30, 0.0 }
 0x195   : > { %386 = vadd.xlane.f32.xlu0 %v385_v31 }
 0x208   : > { %v387_v32 = vpop.xlane.xlu0 %386 }
 0x209   : > { %v388_v33 = vmul.f32 %v387_v32, %v381_v26 }
 0x20b   : > { %v389_v34 = vadd.f32 1e-05, %v388_v33 }
 0x20d   : > { %519 = vrsqrt.f32 %v389_v34  ;;  %vm396_vm4 = vweird.f32 %v389_v34 }
 0x213   : > { %v520_v35 = vpop.eup %519 }
 0x214   : > { %v391_v36 = vmul.f32 %v520_v35, %v389_v34  ;;  %vm397_vm3 = vweird.f32 %v520_v35 }
 0x215   : > { %vm398_vm5 = vmor %vm396_vm4, %vm397_vm3 }
 0x216   : > { %v392_v37 = vmul.f32 %v520_v35, %v391_v36 }
 0x218   : > { %v393_v38 = vmul.f32 0.5, %v392_v37 }
 0x21a   : > { %v394_v39 = vsub.f32 1.5, %v393_v38 }
 0x21c   : > { %v395_v40 = vmul.f32 %v520_v35, %v394_v39 }
 0x21e   : > { %v399_v42 = vsel %vm398_vm5, %v520_v35, %v395_v40 }
 0x21f   : > { %v400_v44 = vmul.f32 %v399_v42, %v383_v29 }
 0x221   : > { %v404_v45 = vmul.f32 %v515_v41, %v400_v44 }
 0x223   : > { %v408_v46 = vadd.f32 %v516_v43, %v404_v45 }
 0x225   : > { %409 = vst.msk [vmem:[%s273_s8] sm:$0xff] %vm297_vm0, %v408_v46 }
 0x226 PF: > { %s17_s24 = sadd.s32 1, %s527_s24  }
 0x227   : > { %p14_p4 = scmp.ge.s32.totalorder %s17_s24, 4  }
 0x229   :  { %16 = sbr.rel (!%p14_p4) target bundleno = 1 (0x1), region = 78 }

// kernel: transformer_layer_sequence.6
= control target key start
LH: loop header
LB: loop body
LE: loop exit
PB: predicated region body
PF: predicated region fallthrough
CT: control target
= control target key end

     0   :  { %s1112_s21 = smov 0   ;;  %s1223_s0 = inlined_call_operand.vmem [shape: f32[2,8,32], index: 0, kind: input, shape index: {}]   ;;  %s1224_s1 = inlined_call_operand.vmem [shape: f32[2,8,32], index: 1, kind: input, shape index: {}]   ;;  %s1225_s2 = inlined_call_operand.vmem [shape: bf16[32,32], index: 2, kind: input, shape index: {}]   ;;  %s1226_s3 = inlined_call_operand.vmem [shape: bf16[32,32], index: 3, kind: input, shape index: {}]   ;;  %s1227_s4 = inlined_call_operand.vmem [shape: bf16[32,32], index: 4, kind: input, shape index: {}]   ;;  %s1228_s5 = inlined_call_operand.vmem [shape: bf16[32,32], index: 5, kind: input, shape index: {}]   ;;  %s1229_s6 = inlined_call_operand.vmem [shape: f32[1,32], index: 6, kind: input, shape index: {}]   ;;  %s1230_s7 = inlined_call_operand.vmem [shape: f32[1,32], index: 7, kind: input, shape index: {}]   ;;  %s1231_s8 = inlined_call_operand.vmem [shape: f32[1,32], index: 8, kind: input, shape index: {}]   ;;  %s1232_s9 = inlined_call_operand.vmem [shape: f32[1,32], index: 9, kind: input, shape index: {}]   ;;  %s1233_s10 = inlined_call_operand.vmem [shape: f32[1,32], index: 10, kind: input, shape index: {}]   ;;  %s1234_s11 = inlined_call_operand.vmem [shape: f32[1,32], index: 11, kind: input, shape index: {}]   ;;  %s1235_s12 = inlined_call_operand.vmem [shape: f32[2,8,32], index: 12, kind: output, shape index: {}]  }
   0x1 LB: > { %s929_s22 = sadd.s32 4294967295, %s1038_s21   ;;  %p933_p0 = scmp.ge.s32.totalorder %s1038_s21, 1  ;;  %s1038_s21 = sphi %s1112_s21, %s22_s21  }
   0x2   : > { %p370_p1 = scmp.lt.s32.totalorder %s1038_s21, 3 }
   0x4   : > { %p371_p2 = pnand %p933_p0, %p370_p1 }
   0x5   : > { %p414_p3 = scmp.lt.s32.totalorder (!%p371_p2), %s929_s22, 1  ;;  %s1040_s29 = smov (!%p371_p2), 112  }
   0x6   : > { %374 = sbr.rel (%p371_p2) target bundleno = 1201 (0x4b1), region = 68  ;;  %s1041_s30 = smov (!%p371_p2), 120  }
   0x7   : > { %s1042_s14 = smov (!%p371_p2), 104   ;;  %s1043_s17 = smov (!%p371_p2), 8  }
   0x8   : > { %s1044_s18 = smov (!%p371_p2), 16  }
   0xb   : > { %v984_v0 = vld [vmem:[%s1225_s2 + $0x8] sm:$0xff]  ;;  %v983_v2 = vld [vmem:[%s1225_s2] sm:$0xff]  ;;  %s1237_s22 = smov (!%p414_p3, %s929_s22), 1  ;;  %vm468_vm0 = vcmask 261120   ;;  %vm549_vm1 = vcmask 64512   ;;  %vm582_vm2 = vcmask 1043456  }
   0xc   : > { %v986_v1 = vld [vmem:[%s1226_s3 + $0x8] sm:$0xff]  ;;  %478 = vmatpush.bf16.msra.mxu0 %v984_v0  ;;  %v985_v3 = vld [vmem:[%s1226_s3] sm:$0xff]  ;;  %s1132_s13 = sshll.u32 %s1237_s22, 3  ;;  %vm665_vm3 = vcmask 130112   ;;  %vm727_vm4 = vcmask 195712   ;;  %vm789_vm5 = vcmask 261312  }
   0xd   : > { %507 = vmatpush.bf16.msra.mxu1 %v986_v1  ;;  %s417_s16 = scalar_lea.vmem %s1223_s0, %s1132_s13  ;;  %s421_s19 = scalar_lea.vmem %s1224_s1, %s1132_s13  ;;  %v988_v8 = vld [vmem:[%s1227_s4 + $0x8] sm:$0xff]  ;;  %v987_v9 = vld [vmem:[%s1227_s4] sm:$0xff] }
   0xe   : > { %v1142_v4 = vld [vmem:[%s417_s16] sm:$0xff]  ;;  %539 = vmatpush.bf16.msra.mxu2 %v988_v8  ;;  %s425_s16 = scalar_lea.vmem %s1235_s12, %s1132_s13 }
   0xf   : > { %v428_v5 = vld [vmem:[%s421_s19] sm:$0xff]  ;;  %v514_v10 = vpack.c.bf16 %v1142_v4, %v1142_v4  ;;  %s1045_s19 = smov 24  }
  0x10   : > { %479 = vmatpush.bf16.msra.mxu0 %v983_v2  ;;  %v429_v6 = vadd.f32 %v428_v5, %v1142_v4  ;;  %v1006_v11 = vld [vmem:[%s1229_s6] ss:$0 sm:$0xff] }
  0x11   : > { %508 = vmatpush.bf16.msra.mxu1 %v985_v3  ;;  %v1007_v12 = vld [vmem:[%s1230_s7] ss:$0 sm:$0xff] }
  0x12   : > { %v452_v7 = vpack.c.bf16 %v429_v6, %v429_v6  ;;  %540 = vmatpush.bf16.msra.mxu2 %v987_v9  ;;  %v1008_v27 = vld [vmem:[%s1231_s8] ss:$0 sm:$0xff] }
  0x14   : > { %945 = vmatmul.msk.bf16.vlgmr.msra.gmra.mxu0 %vm468_vm0, %v452_v7  ;;  %954 = vmatmul.msk.bf16.vlgmr.msra.gmra.mxu1 %vm468_vm0, %v452_v7 }
  0x15   : > { %963 = vmatmul.msk.bf16.vlgmr.msra.gmra.mxu2 %vm468_vm0, %v514_v10 }
  0x91   : > { %v481_v13 = vpop.f32.mrf.mxu0  ;;  %v510_v14 = vpop.f32.mrf.mxu1 }
  0x92   : > { %v482_v15 = vadd.f32 %v1006_v11, %v481_v13  ;;  %v511_v16 = vadd.f32 %v1007_v12, %v510_v14 }
  0x94   : > { %v485_v17 = vmul.f32 0.35355338, %v482_v15  ;;  %v547_v18 = vpack.c.bf16 %v511_v16, %v511_v16 }
  0x96   : > { %v546_v19 = vpack.c.bf16 %v485_v17, %v485_v17  ;;  %669 = vrot.lane.b32.xlu1 %v547_v18, %s1040_s29  ;;  %606 = vrot.lane.b32.xlu0 %v547_v18, %s1041_s30  ;;  %v554_v20 = vsel %vm549_vm1, %v547_v18, 0 }
  0x97   : > { %563 = vmatpush.bf16.xpose.msra.mxu3 %v554_v20 }
  0x98   : > { %667 = vrot.lane.b32.xlu2 %v546_v19, %s1040_s29  ;;  %v542_v28 = vpop.f32.mrf.mxu2 }
  0x99   : > { %v483_v21 = vpop.f32.mrf.mxu0  ;;  %v512_v22 = vpop.f32.mrf.mxu1  ;;  %v543_v29 = vadd.f32 %v1008_v27, %v542_v28 }
  0x9b   : > { %v548_v31 = vpack.c.bf16 %v543_v29, %v543_v29 }
  0x9d   : > { %v584_v36 = vsel %vm582_vm2, %v548_v31, 0 }
  0x9e   : > { %731 = vrot.lane.b32.xlu1 %v547_v18, %s1042_s14  ;;  %603 = vrot.lane.b32.xlu0 %v546_v19, %s1041_s30 }
  0x9f   : > { %964 = vmatmul.msk.bf16.vlgmr.msra.gmra.mxu3 %vm549_vm1, %v546_v19  ;;  %593 = vmatpush.bf16.msrb.mxu0 %v584_v36 }
  0xa0   : > { %729 = vrot.lane.b32.xlu2 %v546_v19, %s1042_s14  ;;  %v544_v35 = vpop.f32.mrf.mxu2 }
  0xa8   : > { %638 = vrot.lane.b32.xlu2 %v548_v31, %s1041_s30 }
  0xf2   : > { %v668_v30 = vpop.permute.xlu2 %667 }
  0xfa   : > { %v730_v37 = vpop.permute.xlu2 %729 }
 0x102   : > { %v639_v48 = vpop.permute.xlu2 %638 }
 0x103   : > { %v644_v49 = vsel %vm582_vm2, %v639_v48, 0 }
 0x104   : > { %653 = vmatpush.bf16.msrb.mxu2 %v644_v49 }
 0x108   : > { %v670_v23 = vpop.permute.xlu1 %669  ;;  %v607_v24 = vpop.permute.xlu0 %606 }
 0x109   : > { %v612_v25 = vsel %vm549_vm1, %v607_v24, 0  ;;  %v675_v26 = vsel %vm549_vm1, %v670_v23, 0 }
 0x10a   : > { %621 = vmatpush.bf16.xpose.msrb.mxu1 %v612_v25  ;;  %684 = vmatpush.bf16.xpose.msrb.mxu3 %v675_v26 }
 0x110   : > { %v732_v32 = vpop.permute.xlu1 %731  ;;  %v604_v33 = vpop.permute.xlu0 %603 }
 0x111   : > { %v737_v34 = vsel %vm549_vm1, %v732_v32, 0  ;;  %966 = vmatmul.msk.bf16.vlgmr.msrb.gmra.mxu1 %vm549_vm1, %v604_v33  ;;  %968 = vmatmul.msk.bf16.vlgmr.msrb.gmra.mxu3 %vm549_vm1, %v668_v30 }
 0x112   : > { %746 = vmatpush.bf16.xpose.msra.mxu1 %v737_v34 }
 0x121   : > { %970 = vmatmul.msk.bf16.vlgmr.msra.gmra.mxu1 %vm549_vm1, %v730_v37 }
 0x122   : > { %v565_v38 = vpop.f32.mrf.mxu3 }
 0x123   : > { %v569_v39 = vsel %vm549_vm1, %v565_v38, -inf }
 0x124   : > { %570 = vmax.xlane.f32.xlu1 %v569_v39  ;;  %v989_v39 = vld [vmem:[%s1228_s5] sm:$0xff] }
 0x12a   : > { %v567_v40 = vpop.f32.mrf.mxu3 }
 0x13d   : > { %762 = vrot.lane.b32.xlu1 %v548_v31, %s1042_s14 }
 0x18e   : > { %v623_v41 = vpop.f32.mrf.mxu1 }
 0x18f   : > { %v627_v42 = vsel %vm549_vm1, %v623_v41, -inf }
 0x190   : > { %628 = vmax.xlane.f32.xlu0 %v627_v42 }
 0x194   : > { %v686_v43 = vpop.f32.mrf.mxu3 }
 0x195   : > { %v690_v46 = vsel %vm549_vm1, %v686_v43, -inf }
 0x196   : > { %v625_v44 = vpop.f32.mrf.mxu1 }
 0x197   : > { %v571_v45 = vpop.xlane.xlu1 %570  ;;  %v1009_v44 = vld [vmem:[%s1232_s9] ss:$0 sm:$0xff] }
 0x198   : > { %v572_v47 = vsub.f32 %v565_v38, %v571_v45  ;;  %691 = vmax.xlane.f32.xlu0 %v690_v46  ;;  %v990_v38 = vld [vmem:[%s1228_s5 + $0x8] sm:$0xff]  ;;  %v796_v45 = vadd.f32 %v1009_v44, %v1142_v4 }
 0x199   : > { %818 = vmatpush.bf16.msra.mxu3 %v990_v38 }
 0x19a   : > { %v573_v50 = vmul.f32 1.442695, %v572_v47 }
 0x19c   : > { %1012 = vpow2.f32 %v573_v50  ;;  %v688_v51 = vpop.f32.mrf.mxu3  ;;  %v1046_v50 = vmov 32.0  }
 0x19d   : > { %819 = vmatpush.bf16.msra.mxu3 %v989_v39 }
 0x19e   : > { %v748_v52 = vpop.f32.mrf.mxu1 }
 0x19f   : > { %v752_v53 = vsel %vm549_vm1, %v748_v52, -inf }
 0x1a0   : > { %753 = vmax.xlane.f32.xlu2 %v752_v53 }
 0x1a2   : > { %v1013_v54 = vpop.eup %1012 }
 0x1a3   : > { %v575_v55 = vsel %vm549_vm1, %v1013_v54, 0.0  ;;  %v578_v56 = vpack.c.bf16 %v1013_v54, %v1013_v54 }
 0x1a4   : > { %576 = vadd.xlane.f32.xlu1 %v575_v55 }
 0x1a5   : > { %965 = vmatmul.msk.bf16.vlgmr.msrb.gmra.mxu0 %vm549_vm1, %v578_v56 }
 0x1a6   : > { %v750_v57 = vpop.f32.mrf.mxu1 }
 0x1af   : > { %v763_v58 = vpop.permute.xlu1 %762 }
 0x1b0   : > { %v768_v59 = vsel %vm582_vm2, %v763_v58, 0 }
 0x1b1   : > { %777 = vmatpush.bf16.msra.mxu2 %v768_v59 }
 0x1b8   : > { %700 = vrot.lane.b32.xlu2 %v548_v31, %s1040_s29 }
 0x203   : > { %v629_v60 = vpop.xlane.xlu0 %628 }
 0x204   : > { %v630_v61 = vsub.f32 %v623_v41, %v629_v60 }
 0x206   : > { %v631_v62 = vmul.f32 1.442695, %v630_v61 }
 0x208   : > { %1014 = vpow2.f32 %v631_v62 }
 0x20b   : > { %v692_v63 = vpop.xlane.xlu0 %691 }
 0x20c   : > { %v693_v0 = vsub.f32 %v686_v43, %v692_v63 }
 0x20e   : > { %v1015_v1 = vpop.eup %1014  ;;  %v694_v2 = vmul.f32 1.442695, %v693_v0 }
 0x20f   : > { %v633_v3 = vsel %vm549_vm1, %v1015_v1, 0.0  ;;  %v636_v5 = vpack.c.bf16 %v1015_v1, %v1015_v1 }
 0x210   : > { %1016 = vpow2.f32 %v694_v2  ;;  %634 = vadd.xlane.f32.xlu0 %v633_v3 }
 0x211   : > { %967 = vmatmul.msk.bf16.vlgmr.msrb.gmra.mxu2 %vm549_vm1, %v636_v5 }
 0x213   : > { %v754_v6 = vpop.xlane.xlu2 %753 }
 0x214   : > { %v755_v7 = vsub.f32 %v748_v52, %v754_v6 }
 0x216   : > { %v1017_v8 = vpop.eup %1016  ;;  %v756_v9 = vmul.f32 1.442695, %v755_v7  ;;  %v1010_v7 = vld [vmem:[%s1233_s10] ss:$0 sm:$0xff] }
 0x217   : > { %v696_v10 = vsel %vm549_vm1, %v1017_v8, 0.0  ;;  %v577_v11 = vpop.xlane.xlu1 %576  ;;  %v699_v15 = vpack.c.bf16 %v1017_v8, %v1017_v8 }
 0x218   : > { %1018 = vpow2.f32 %v756_v9  ;;  %697 = vadd.xlane.f32.xlu0 %v696_v10  ;;  %v1011_v9 = vld [vmem:[%s1234_s11] ss:$0 sm:$0xff] }
 0x219   : > { %1020 = vrcp.f32 %v577_v11 }
 0x21b   : > { %v701_v12 = vpop.permute.xlu2 %700 }
 0x21c   : > { %v706_v13 = vsel %vm582_vm2, %v701_v12, 0 }
 0x21d   : > { %715 = vmatpush.bf16.msra.mxu0 %v706_v13 }
 0x21e   : > { %v1019_v14 = vpop.eup %1018 }
 0x21f   : > { %v761_v16 = vpack.c.bf16 %v1019_v14, %v1019_v14  ;;  %v758_v17 = vsel %vm549_vm1, %v1019_v14, 0.0  ;;  %v1021_v18 = vpop.eup %1020 }
 0x220   : > { %969 = vmatmul.msk.bf16.vlgmr.msra.gmra.mxu0 %vm549_vm1, %v699_v15  ;;  %759 = vadd.xlane.f32.xlu0 %v758_v17 }
 0x221   : > { %971 = vmatmul.msk.bf16.vlgmr.msra.gmra.mxu2 %vm549_vm1, %v761_v16 }
 0x222   : > { %v595_v19 = vpop.f32.mrf.mxu0 }
 0x223   : > { %v600_v20 = vmul.f32 %v1021_v18, %v595_v19 }
 0x225   : > { %601 = vst.msk [vmem:[#allocation2] sm:$0xff] %vm549_vm1, %v600_v20 }
 0x22a   : > { %v597_v21 = vpop.f32.mrf.mxu0 }
 0x283   : > { %v635_v22 = vpop.xlane.xlu0 %634 }
 0x284   : > { %1022 = vrcp.f32 %v635_v22 }
 0x28a   : > { %v1023_v24 = vpop.eup %1022 }
 0x28b   : > { %v698_v23 = vpop.xlane.xlu0 %697 }
 0x28c   : > { %1024 = vrcp.f32 %v698_v23 }
 0x292   : > { %v1025_v29 = vpop.eup %1024 }
 0x293   : > { %v760_v27 = vpop.xlane.xlu0 %759 }
 0x294   : > { %v655_v25 = vpop.f32.mrf.mxu2  ;;  %1026 = vrcp.f32 %v760_v27 }
 0x295   : > { %v660_v26 = vmul.f32 %v1023_v24, %v655_v25  ;;  %1028 = vrcp.f32 %v1046_v50 }
 0x297   : > { %662 = vrot.lane.b32.xlu2 %v660_v26, %s1043_s17 }
 0x29a   : > { %v1027_v32 = vpop.eup %1026 }
 0x29b   : > { %v1029_v51 = vpop.eup %1028 }
 0x29c   : > { %v657_v28 = vpop.f32.mrf.mxu2  ;;  %v830_v52 = vmul.f32 32.0, %v1029_v51  ;;  %vm834_vm6 = vweird.f32 %v1029_v51 }
 0x29d   : > { %v717_v30 = vpop.f32.mrf.mxu0 }
 0x29e   : > { %v722_v31 = vmul.f32 %v1025_v29, %v717_v30  ;;  %v831_v53 = vsub.f32 1.0, %v830_v52 }
 0x2a0   : > { %724 = vrot.lane.b32.xlu0 %v722_v31, %s1044_s18  ;;  %v832_v54 = vmul.f32 %v1029_v51, %v831_v53 }
 0x2a2   : > { %v833_v55 = vadd.f32 %v1029_v51, %v832_v54 }
 0x2a4   : > { %v779_v33 = vpop.f32.mrf.mxu2  ;;  %v835_v56 = vsel %vm834_vm6, %v1029_v51, %v833_v55 }
 0x2a5   : > { %v784_v34 = vmul.f32 %v1027_v32, %v779_v33  ;;  %v719_v35 = vpop.f32.mrf.mxu0 }
 0x2a7   : > { %786 = vrot.lane.b32.xlu2 %v784_v34, %s1045_s19 }
 0x2ac   : > { %v781_v36 = vpop.f32.mrf.mxu2 }
 0x2f1   : > { %v663_v37 = vpop.permute.xlu2 %662 }
 0x2f2   : > { %666 = vst.msk [vmem:[#allocation2] sm:$0xff] %vm665_vm3, %v663_v37 }
 0x301   : > { %v787_v41 = vpop.permute.xlu2 %786 }
 0x312   : > { %v725_v40 = vpop.permute.xlu0 %724 }
 0x313   : > { %728 = vst.msk [vmem:[#allocation2] sm:$0xff] %vm727_vm4, %v725_v40 }
 0x314   : > { %790 = vst.msk [vmem:[#allocation2] sm:$0xff] %vm789_vm5, %v787_v41 }
 0x31b   : > { %v791_v42 = vld [vmem:[#allocation2] sm:$0xff] }
 0x31c   : > { %v792_v43 = vpack.c.bf16 %v791_v42, %v791_v42 }
 0x31e   : > { %980 = vmatmul.msk.bf16.vlgmr.msra.gmra.mxu3 %vm468_vm0, %v792_v43 }
 0x3a1   : > { %v821_v46 = vpop.f32.mrf.mxu3 }
 0x3a2   : > { %v825_v47 = vadd.f32 %v821_v46, %v796_v45 }
 0x3a4   : > { %v826_v48 = vsel %vm468_vm0, %v825_v47, 0.0 }
 0x3a5   : > { %827 = vadd.xlane.f32.xlu2 %v826_v48 }
 0x3a9   : > { %v823_v49 = vpop.f32.mrf.mxu3 }
 0x418   : > { %v828_v57 = vpop.xlane.xlu2 %827 }
 0x419   : > { %v836_v58 = vmul.f32 %v835_v56, %v828_v57 }
 0x41b   : > { %v837_v59 = vsub.f32 %v825_v47, %v836_v58 }
 0x41d   : > { %v838_v60 = vmul.f32 %v837_v59, %v837_v59 }
 0x41f   : > { %v839_v4 = vsel %vm468_vm0, %v838_v60, 0.0 }
 0x420   : > { %840 = vadd.xlane.f32.xlu0 %v839_v4 }
 0x493   : > { %v841_v61 = vpop.xlane.xlu0 %840 }
 0x494   : > { %v842_v62 = vmul.f32 %v841_v61, %v835_v56 }
 0x496   : > { %v843_v63 = vadd.f32 1e-05, %v842_v62 }
 0x498   : > { %1030 = vrsqrt.f32 %v843_v63  ;;  %vm850_vm8 = vweird.f32 %v843_v63 }
 0x49e   : > { %v1031_v0 = vpop.eup %1030 }
 0x49f   : > { %v845_v1 = vmul.f32 %v1031_v0, %v843_v63  ;;  %vm851_vm7 = vweird.f32 %v1031_v0 }
 0x4a0   : > { %vm852_vm9 = vmor %vm850_vm8, %vm851_vm7 }
 0x4a1   : > { %v846_v2 = vmul.f32 %v1031_v0, %v845_v1 }
 0x4a3   : > { %v847_v3 = vmul.f32 0.5, %v846_v2 }
 0x4a5   : > { %v848_v5 = vsub.f32 1.5, %v847_v3 }
 0x4a7   : > { %v849_v6 = vmul.f32 %v1031_v0, %v848_v5 }
 0x4a9   : > { %v853_v8 = vsel %vm852_vm9, %v1031_v0, %v849_v6 }
 0x4aa   : > { %v854_v10 = vmul.f32 %v853_v8, %v837_v59 }
 0x4ac   : > { %v858_v11 = vmul.f32 %v1010_v7, %v854_v10 }
 0x4ae   : > { %v862_v12 = vadd.f32 %v1011_v9, %v858_v11 }
 0x4b0   : > { %863 = vst.msk [vmem:[%s425_s16] sm:$0xff] %vm468_vm0, %v862_v12 }
 0x4b1 PF: > { %s22_s21 = sadd.s32 1, %s1038_s21  }
 0x4b2   : > { %p19_p4 = scmp.ge.s32.totalorder %s22_s21, 4  }
 0x4b4   :  { %21 = sbr.rel (!%p19_p4) target bundleno = 1 (0x1), region = 101 }

// kernel: transformer_layer_sequence.7
= control target key start
LH: loop header
LB: loop body
LE: loop exit
PB: predicated region body
PF: predicated region fallthrough
CT: control target
= control target key end

     0   :  { %s1242_s29 = smov 0   ;;  %s1362_s0 = inlined_call_operand.vmem [shape: f32[2,8,32], index: 0, kind: input, shape index: {}]   ;;  %s1363_s1 = inlined_call_operand.vmem [shape: f32[2,8,32], index: 1, kind: input, shape index: {}]   ;;  %s1364_s2 = inlined_call_operand.vmem [shape: f32[2,8,32], index: 2, kind: input, shape index: {}]   ;;  %s1365_s3 = inlined_call_operand.vmem [shape: f32[2,8,32], index: 3, kind: input, shape index: {}]   ;;  %s1366_s4 = inlined_call_operand.vmem [shape: bf16[32,32], index: 4, kind: input, shape index: {}]   ;;  %s1367_s5 = inlined_call_operand.vmem [shape: bf16[32,32], index: 5, kind: input, shape index: {}]   ;;  %s1368_s6 = inlined_call_operand.vmem [shape: bf16[32,32], index: 6, kind: input, shape index: {}]   ;;  %s1369_s7 = inlined_call_operand.vmem [shape: bf16[32,32], index: 7, kind: input, shape index: {}]   ;;  %s1370_s8 = inlined_call_operand.vmem [shape: f32[1,32], index: 8, kind: input, shape index: {}]   ;;  %s1371_s9 = inlined_call_operand.vmem [shape: f32[1,32], index: 9, kind: input, shape index: {}]   ;;  %s1372_s10 = inlined_call_operand.vmem [shape: f32[1,32], index: 10, kind: input, shape index: {}]   ;;  %s1373_s11 = inlined_call_operand.vmem [shape: f32[1,32], index: 11, kind: input, shape index: {}]   ;;  %s1374_s12 = inlined_call_operand.vmem [shape: f32[1,32], index: 12, kind: input, shape index: {}]   ;;  %s1375_s13 = inlined_call_operand.vmem [shape: f32[1,32], index: 13, kind: input, shape index: {}]   ;;  %s1376_s14 = inlined_call_operand.vmem [shape: f32[2,8,32], index: 14, kind: output, shape index: {}]  }
   0x1 LB: > { %s1047_s30 = sadd.s32 4294967295, %s1158_s29   ;;  %p1051_p0 = scmp.ge.s32.totalorder %s1158_s29, 1  ;;  %s1158_s29 = sphi %s1242_s29, %s24_s29  }
   0x2   : > { %p438_p1 = scmp.lt.s32.totalorder %s1158_s29, 3 }
   0x4   : > { %p439_p2 = pnand %p1051_p0, %p438_p1 }
   0x5   : > { %p494_p3 = scmp.lt.s32.totalorder (!%p439_p2), %s1047_s30, 1  ;;  %s1160_s16 = smov (!%p439_p2), 112  }
   0x6   : > { %442 = sbr.rel (%p439_p2) target bundleno = 1200 (0x4b0), region = 76  ;;  %s1161_s17 = smov (!%p439_p2), 120  }
   0x7   : > { %s1164_s21 = smov (!%p439_p2), 16   ;;  %s1165_s22 = smov (!%p439_p2), 24  }
   0xb   : > { %v1106_v0 = vld [vmem:[%s1367_s5 + $0x8] sm:$0xff]  ;;  %v1105_v2 = vld [vmem:[%s1367_s5] sm:$0xff]  ;;  %s1378_s30 = smov (!%p494_p3, %s1047_s30), 1  ;;  %vm558_vm0 = vcmask 261120   ;;  %vm643_vm1 = vcmask 64512   ;;  %vm676_vm2 = vcmask 1043456  }
   0xc   : > { %v1104_v1 = vld [vmem:[%s1366_s4 + $0x8] sm:$0xff]  ;;  %601 = vmatpush.bf16.msra.mxu1 %v1106_v0  ;;  %v1103_v3 = vld [vmem:[%s1366_s4] sm:$0xff]  ;;  %s1262_s23 = sshll.u32 %s1378_s30, 3  ;;  %vm759_vm3 = vcmask 130112   ;;  %vm821_vm4 = vcmask 195712   ;;  %vm883_vm5 = vcmask 261312  }
   0xd   : > { %568 = vmatpush.bf16.msra.mxu0 %v1104_v1  ;;  %s501_s26 = scalar_lea.vmem %s1363_s1, %s1262_s23  ;;  %s497_s15 = scalar_lea.vmem %s1362_s0, %s1262_s23  ;;  %v1108_v10 = vld [vmem:[%s1368_s6 + $0x8] sm:$0xff]  ;;  %v1107_v11 = vld [vmem:[%s1368_s6] sm:$0xff] }
   0xe   : > { %v518_v4 = vld [vmem:[%s501_s26] sm:$0xff]  ;;  %s509_s30 = scalar_lea.vmem %s1365_s3, %s1262_s23  ;;  %s505_s20 = scalar_lea.vmem %s1364_s2, %s1262_s23  ;;  %633 = vmatpush.bf16.msra.mxu2 %v1108_v10 }
   0xf   : > { %v576_v5 = vpack.c.bf16 %v518_v4, %v518_v4  ;;  %v1276_v6 = vld [vmem:[%s497_s15] sm:$0xff] }
  0x10   : > { %602 = vmatpush.bf16.msra.mxu1 %v1105_v2  ;;  %v516_v7 = vld [vmem:[%s509_s30] sm:$0xff]  ;;  %s1162_s30 = smov 104  }
  0x11   : > { %569 = vmatpush.bf16.msra.mxu0 %v1103_v3  ;;  %v517_v8 = vadd.f32 %v516_v7, %v1276_v6  ;;  %v519_v12 = vld [vmem:[%s505_s20] sm:$0xff]  ;;  %s1163_s20 = smov 8  }
  0x12   : > { %v608_v13 = vpack.c.bf16 %v519_v12, %v519_v12  ;;  %634 = vmatpush.bf16.msra.mxu2 %v1107_v11  ;;  %v1126_v14 = vld [vmem:[%s1371_s9] ss:$0 sm:$0xff] }
  0x13   : > { %1074 = vmatmul.msk.bf16.vlgmr.msra.gmra.mxu1 %vm558_vm0, %v576_v5  ;;  %v542_v9 = vpack.c.bf16 %v517_v8, %v517_v8  ;;  %v1127_v16 = vld [vmem:[%s1370_s8] ss:$0 sm:$0xff] }
  0x14   : > { %v1128_v30 = vld [vmem:[%s1372_s10] ss:$0 sm:$0xff] }
  0x15   : > { %1065 = vmatmul.msk.bf16.vlgmr.msra.gmra.mxu0 %vm558_vm0, %v542_v9  ;;  %1083 = vmatmul.msk.bf16.vlgmr.msra.gmra.mxu2 %vm558_vm0, %v608_v13 }
  0x90   : > { %v604_v15 = vpop.f32.mrf.mxu1 }
  0x91   : > { %v605_v17 = vadd.f32 %v1126_v14, %v604_v15 }
  0x92   : > { %v571_v19 = vpop.f32.mrf.mxu0 }
  0x93   : > { %v641_v18 = vpack.c.bf16 %v605_v17, %v605_v17  ;;  %v572_v20 = vadd.f32 %v1127_v16, %v571_v19 }
  0x95   : > { %763 = vrot.lane.b32.xlu1 %v641_v18, %s1160_s16  ;;  %700 = vrot.lane.b32.xlu0 %v641_v18, %s1161_s17  ;;  %v648_v21 = vsel %vm643_vm1, %v641_v18, 0  ;;  %v575_v22 = vmul.f32 0.35355338, %v572_v20 }
  0x96   : > { %657 = vmatpush.bf16.xpose.msra.mxu3 %v648_v21 }
  0x97   : > { %v640_v23 = vpack.c.bf16 %v575_v22, %v575_v22 }
  0x98   : > { %v606_v24 = vpop.f32.mrf.mxu1  ;;  %v636_v32 = vpop.f32.mrf.mxu2 }
  0x99   : > { %761 = vrot.lane.b32.xlu2 %v640_v23, %s1160_s16  ;;  %v637_v35 = vadd.f32 %v1128_v30, %v636_v32 }
  0x9a   : > { %v573_v25 = vpop.f32.mrf.mxu0 }
  0x9b   : > { %v642_v37 = vpack.c.bf16 %v637_v35, %v637_v35 }
  0x9d   : > { %825 = vrot.lane.b32.xlu1 %v641_v18, %s1162_s30  ;;  %697 = vrot.lane.b32.xlu0 %v640_v23, %s1161_s17  ;;  %v678_v39 = vsel %vm676_vm2, %v642_v37, 0 }
  0x9e   : > { %1084 = vmatmul.msk.bf16.vlgmr.msra.gmra.mxu3 %vm643_vm1, %v640_v23  ;;  %687 = vmatpush.bf16.msrb.mxu0 %v678_v39 }
  0xa0   : > { %v638_v38 = vpop.f32.mrf.mxu2 }
  0xa1   : > { %823 = vrot.lane.b32.xlu2 %v640_v23, %s1162_s30 }
  0xa9   : > { %732 = vrot.lane.b32.xlu2 %v642_v37, %s1161_s17 }
  0xf3   : > { %v762_v31 = vpop.permute.xlu2 %761 }
  0xfb   : > { %v824_v40 = vpop.permute.xlu2 %823 }
 0x103   : > { %v733_v51 = vpop.permute.xlu2 %732 }
 0x104   : > { %v738_v52 = vsel %vm676_vm2, %v733_v51, 0 }
 0x105   : > { %747 = vmatpush.bf16.msrb.mxu2 %v738_v52 }
 0x107   : > { %v764_v26 = vpop.permute.xlu1 %763  ;;  %v701_v27 = vpop.permute.xlu0 %700 }
 0x108   : > { %v706_v28 = vsel %vm643_vm1, %v701_v27, 0  ;;  %v769_v29 = vsel %vm643_vm1, %v764_v26, 0 }
 0x109   : > { %715 = vmatpush.bf16.xpose.msrb.mxu1 %v706_v28  ;;  %778 = vmatpush.bf16.xpose.msrb.mxu3 %v769_v29 }
 0x10f   : > { %v826_v33 = vpop.permute.xlu1 %825  ;;  %v698_v34 = vpop.permute.xlu0 %697 }
 0x110   : > { %v831_v36 = vsel %vm643_vm1, %v826_v33, 0  ;;  %1086 = vmatmul.msk.bf16.vlgmr.msrb.gmra.mxu1 %vm643_vm1, %v698_v34  ;;  %1088 = vmatmul.msk.bf16.vlgmr.msrb.gmra.mxu3 %vm643_vm1, %v762_v31 }
 0x111   : > { %840 = vmatpush.bf16.xpose.msra.mxu1 %v831_v36 }
 0x120   : > { %1090 = vmatmul.msk.bf16.vlgmr.msra.gmra.mxu1 %vm643_vm1, %v824_v40 }
 0x121   : > { %v659_v41 = vpop.f32.mrf.mxu3 }
 0x122   : > { %v663_v42 = vsel %vm643_vm1, %v659_v41, -inf }
 0x123   : > { %664 = vmax.xlane.f32.xlu1 %v663_v42  ;;  %v1109_v42 = vld [vmem:[%s1369_s7] sm:$0xff] }
 0x129   : > { %v661_v43 = vpop.f32.mrf.mxu3 }
 0x13c   : > { %856 = vrot.lane.b32.xlu1 %v642_v37, %s1162_s30 }
 0x18d   : > { %v717_v44 = vpop.f32.mrf.mxu1 }
 0x18e   : > { %v721_v45 = vsel %vm643_vm1, %v717_v44, -inf }
 0x18f   : > { %722 = vmax.xlane.f32.xlu0 %v721_v45 }
 0x193   : > { %v780_v46 = vpop.f32.mrf.mxu3 }
 0x194   : > { %v784_v49 = vsel %vm643_vm1, %v780_v46, -inf }
 0x195   : > { %v719_v47 = vpop.f32.mrf.mxu1 }
 0x196   : > { %v665_v48 = vpop.xlane.xlu1 %664  ;;  %v1129_v47 = vld [vmem:[%s1373_s11] ss:$0 sm:$0xff] }
 0x197   : > { %v666_v50 = vsub.f32 %v659_v41, %v665_v48  ;;  %785 = vmax.xlane.f32.xlu0 %v784_v49  ;;  %v1110_v41 = vld [vmem:[%s1369_s7 + $0x8] sm:$0xff]  ;;  %v890_v48 = vadd.f32 %v1129_v47, %v1276_v6 }
 0x198   : > { %912 = vmatpush.bf16.msra.mxu3 %v1110_v41 }
 0x199   : > { %v667_v53 = vmul.f32 1.442695, %v666_v50 }
 0x19b   : > { %1132 = vpow2.f32 %v667_v53  ;;  %v782_v54 = vpop.f32.mrf.mxu3  ;;  %v1166_v53 = vmov 32.0  }
 0x19c   : > { %913 = vmatpush.bf16.msra.mxu3 %v1109_v42 }
 0x19d   : > { %v842_v55 = vpop.f32.mrf.mxu1 }
 0x19e   : > { %v846_v56 = vsel %vm643_vm1, %v842_v55, -inf }
 0x19f   : > { %847 = vmax.xlane.f32.xlu2 %v846_v56 }
 0x1a1   : > { %v1133_v57 = vpop.eup %1132 }
 0x1a2   : > { %v669_v58 = vsel %vm643_vm1, %v1133_v57, 0.0  ;;  %v672_v59 = vpack.c.bf16 %v1133_v57, %v1133_v57 }
 0x1a3   : > { %670 = vadd.xlane.f32.xlu1 %v669_v58 }
 0x1a4   : > { %1085 = vmatmul.msk.bf16.vlgmr.msrb.gmra.mxu0 %vm643_vm1, %v672_v59 }
 0x1a5   : > { %v844_v60 = vpop.f32.mrf.mxu1 }
 0x1ae   : > { %v857_v61 = vpop.permute.xlu1 %856 }
 0x1af   : > { %v862_v62 = vsel %vm676_vm2, %v857_v61, 0 }
 0x1b0   : > { %871 = vmatpush.bf16.msra.mxu2 %v862_v62 }
 0x1b7   : > { %794 = vrot.lane.b32.xlu2 %v642_v37, %s1160_s16 }
 0x202   : > { %v723_v63 = vpop.xlane.xlu0 %722 }
 0x203   : > { %v724_v0 = vsub.f32 %v717_v44, %v723_v63 }
 0x205   : > { %v725_v1 = vmul.f32 1.442695, %v724_v0 }
 0x207   : > { %1134 = vpow2.f32 %v725_v1 }
 0x20a   : > { %v786_v2 = vpop.xlane.xlu0 %785 }
 0x20b   : > { %v787_v3 = vsub.f32 %v780_v46, %v786_v2 }
 0x20d   : > { %v1135_v4 = vpop.eup %1134  ;;  %v788_v5 = vmul.f32 1.442695, %v787_v3 }
 0x20e   : > { %v727_v7 = vsel %vm643_vm1, %v1135_v4, 0.0  ;;  %v730_v8 = vpack.c.bf16 %v1135_v4, %v1135_v4 }
 0x20f   : > { %1136 = vpow2.f32 %v788_v5  ;;  %728 = vadd.xlane.f32.xlu0 %v727_v7 }
 0x210   : > { %1087 = vmatmul.msk.bf16.vlgmr.msrb.gmra.mxu2 %vm643_vm1, %v730_v8 }
 0x212   : > { %v848_v9 = vpop.xlane.xlu2 %847 }
 0x213   : > { %v849_v10 = vsub.f32 %v842_v55, %v848_v9 }
 0x215   : > { %v1137_v11 = vpop.eup %1136  ;;  %v850_v12 = vmul.f32 1.442695, %v849_v10  ;;  %v1130_v10 = vld [vmem:[%s1374_s12] ss:$0 sm:$0xff] }
 0x216   : > { %v790_v13 = vsel %vm643_vm1, %v1137_v11, 0.0  ;;  %v671_v14 = vpop.xlane.xlu1 %670  ;;  %v793_v18 = vpack.c.bf16 %v1137_v11, %v1137_v11 }
 0x217   : > { %1138 = vpow2.f32 %v850_v12  ;;  %791 = vadd.xlane.f32.xlu0 %v790_v13  ;;  %v1131_v12 = vld [vmem:[%s1375_s13] ss:$0 sm:$0xff] }
 0x218   : > { %1140 = vrcp.f32 %v671_v14 }
 0x21a   : > { %v795_v15 = vpop.permute.xlu2 %794 }
 0x21b   : > { %v800_v16 = vsel %vm676_vm2, %v795_v15, 0 }
 0x21c   : > { %809 = vmatpush.bf16.msra.mxu0 %v800_v16 }
 0x21d   : > { %v1139_v17 = vpop.eup %1138 }
 0x21e   : > { %v855_v19 = vpack.c.bf16 %v1139_v17, %v1139_v17  ;;  %v852_v20 = vsel %vm643_vm1, %v1139_v17, 0.0  ;;  %v1141_v21 = vpop.eup %1140 }
 0x21f   : > { %1089 = vmatmul.msk.bf16.vlgmr.msra.gmra.mxu0 %vm643_vm1, %v793_v18  ;;  %853 = vadd.xlane.f32.xlu0 %v852_v20 }
 0x220   : > { %1091 = vmatmul.msk.bf16.vlgmr.msra.gmra.mxu2 %vm643_vm1, %v855_v19 }
 0x221   : > { %v689_v22 = vpop.f32.mrf.mxu0 }
 0x222   : > { %v694_v23 = vmul.f32 %v1141_v21, %v689_v22 }
 0x224   : > { %695 = vst.msk [vmem:[#allocation2] sm:$0xff] %vm643_vm1, %v694_v23 }
 0x229   : > { %v691_v24 = vpop.f32.mrf.mxu0 }
 0x282   : > { %v729_v25 = vpop.xlane.xlu0 %728 }
 0x283   : > { %1142 = vrcp.f32 %v729_v25 }
 0x289   : > { %v1143_v27 = vpop.eup %1142 }
 0x28a   : > { %v792_v26 = vpop.xlane.xlu0 %791 }
 0x28b   : > { %1144 = vrcp.f32 %v792_v26 }
 0x291   : > { %v1145_v32 = vpop.eup %1144 }
 0x292   : > { %v854_v30 = vpop.xlane.xlu0 %853 }
 0x293   : > { %v749_v28 = vpop.f32.mrf.mxu2  ;;  %1146 = vrcp.f32 %v854_v30 }
 0x294   : > { %v754_v29 = vmul.f32 %v1143_v27, %v749_v28  ;;  %1148 = vrcp.f32 %v1166_v53 }
 0x296   : > { %756 = vrot.lane.b32.xlu2 %v754_v29, %s1163_s20 }
 0x299   : > { %v1147_v35 = vpop.eup %1146 }
 0x29a   : > { %v1149_v54 = vpop.eup %1148 }
 0x29b   : > { %v751_v31 = vpop.f32.mrf.mxu2  ;;  %v924_v55 = vmul.f32 32.0, %v1149_v54  ;;  %vm928_vm6 = vweird.f32 %v1149_v54 }
 0x29c   : > { %v811_v33 = vpop.f32.mrf.mxu0 }
 0x29d   : > { %v816_v34 = vmul.f32 %v1145_v32, %v811_v33  ;;  %v925_v56 = vsub.f32 1.0, %v924_v55 }
 0x29f   : > { %818 = vrot.lane.b32.xlu0 %v816_v34, %s1164_s21  ;;  %v926_v57 = vmul.f32 %v1149_v54, %v925_v56  ;;  %s513_s21 = scalar_lea.vmem %s1376_s14, %s1262_s23 }
 0x2a1   : > { %v927_v58 = vadd.f32 %v1149_v54, %v926_v57 }
 0x2a3   : > { %v873_v36 = vpop.f32.mrf.mxu2  ;;  %v929_v59 = vsel %vm928_vm6, %v1149_v54, %v927_v58 }
 0x2a4   : > { %v878_v37 = vmul.f32 %v1147_v35, %v873_v36  ;;  %v813_v38 = vpop.f32.mrf.mxu0 }
 0x2a6   : > { %880 = vrot.lane.b32.xlu2 %v878_v37, %s1165_s22 }
 0x2ab   : > { %v875_v39 = vpop.f32.mrf.mxu2 }
 0x2f0   : > { %v757_v40 = vpop.permute.xlu2 %756 }
 0x2f1   : > { %760 = vst.msk [vmem:[#allocation2] sm:$0xff] %vm759_vm3, %v757_v40 }
 0x300   : > { %v881_v44 = vpop.permute.xlu2 %880 }
 0x311   : > { %v819_v43 = vpop.permute.xlu0 %818 }
 0x312   : > { %822 = vst.msk [vmem:[#allocation2] sm:$0xff] %vm821_vm4, %v819_v43 }
 0x313   : > { %884 = vst.msk [vmem:[#allocation2] sm:$0xff] %vm883_vm5, %v881_v44 }
 0x31a   : > { %v885_v45 = vld [vmem:[#allocation2] sm:$0xff] }
 0x31b   : > { %v886_v46 = vpack.c.bf16 %v885_v45, %v885_v45 }
 0x31d   : > { %1100 = vmatmul.msk.bf16.vlgmr.msra.gmra.mxu3 %vm558_vm0, %v886_v46 }
 0x3a0   : > { %v915_v49 = vpop.f32.mrf.mxu3 }
 0x3a1   : > { %v919_v50 = vadd.f32 %v915_v49, %v890_v48 }
 0x3a3   : > { %v920_v51 = vsel %vm558_vm0, %v919_v50, 0.0 }
 0x3a4   : > { %921 = vadd.xlane.f32.xlu2 %v920_v51 }
 0x3a8   : > { %v917_v52 = vpop.f32.mrf.mxu3 }
 0x417   : > { %v922_v60 = vpop.xlane.xlu2 %921 }
 0x418   : > { %v930_v61 = vmul.f32 %v929_v59, %v922_v60 }
 0x41a   : > { %v931_v62 = vsub.f32 %v919_v50, %v930_v61 }
 0x41c   : > { %v932_v63 = vmul.f32 %v931_v62, %v931_v62 }
 0x41e   : > { %v933_v6 = vsel %vm558_vm0, %v932_v63, 0.0 }
 0x41f   : > { %934 = vadd.xlane.f32.xlu0 %v933_v6 }
 0x492   : > { %v935_v0 = vpop.xlane.xlu0 %934 }
 0x493   : > { %v936_v1 = vmul.f32 %v935_v0, %v929_v59 }
 0x495   : > { %v937_v2 = vadd.f32 1e-05, %v936_v1 }
 0x497   : > { %1150 = vrsqrt.f32 %v937_v2  ;;  %vm944_vm8 = vweird.f32 %v937_v2 }
 0x49d   : > { %v1151_v3 = vpop.eup %1150 }
 0x49e   : > { %v939_v4 = vmul.f32 %v1151_v3, %v937_v2  ;;  %vm945_vm7 = vweird.f32 %v1151_v3 }
 0x49f   : > { %vm946_vm9 = vmor %vm944_vm8, %vm945_vm7 }
 0x4a0   : > { %v940_v5 = vmul.f32 %v1151_v3, %v939_v4 }
 0x4a2   : > { %v941_v7 = vmul.f32 0.5, %v940_v5 }
 0x4a4   : > { %v942_v8 = vsub.f32 1.5, %v941_v7 }
 0x4a6   : > { %v943_v9 = vmul.f32 %v1151_v3, %v942_v8 }
 0x4a8   : > { %v947_v11 = vsel %vm946_vm9, %v1151_v3, %v943_v9 }
 0x4a9   : > { %v948_v13 = vmul.f32 %v947_v11, %v931_v62 }
 0x4ab   : > { %v952_v14 = vmul.f32 %v1130_v10, %v948_v13 }
 0x4ad   : > { %v956_v15 = vadd.f32 %v1131_v12, %v952_v14 }
 0x4af   : > { %957 = vst.msk [vmem:[%s513_s21] sm:$0xff] %vm558_vm0, %v956_v15 }
 0x4b0 PF: > { %s24_s29 = sadd.s32 1, %s1158_s29  }
 0x4b1   : > { %p21_p4 = scmp.ge.s32.totalorder %s24_s29, 4  }
 0x4b3   :  { %23 = sbr.rel (!%p21_p4) target bundleno = 1 (0x1), region = 115 }

</bundles_post_ra>
